<compile_context>
chip_gen: v5e
topology: v5e:2x2
jax: 0.10.0
libtpu: 0.0.40
codegen_flags: <defaults>
</compile_context>

<pallas_src>
import functools

import jax
import jax.numpy as jnp
from jax import lax
from jax.experimental import pallas as pl
from jax.experimental.pallas import tpu as pltpu

NUM_INP = 8
HIDDEN = 64
SUBLANE = 8  # f32 sublane tile; batch is padded to a multiple of this


def _ts_rnn2_kernel(x_ref,      # ((S+1)*Bp, I) f32 seq-major input; last block is zeros
                    wihb_ref,   # (I, 8H)  f32  input weight, interleaved cols, L1 cols zero
                    bias_ref,   # (1, 8H)  f32  combined biases: b0 in L0 cols, b1 in L1 cols
                    mcorr_ref,  # (1, 8H)  f32  initial-carry correction (-b1_g in g1 cols)
                    wbig_ref,   # (2H, 8H) bf16 fused recurrent weight [Whh0|Wih1 ; 0|Whh1]
                    wm1_ref,    # (H, 64)  bf16 mlp W1 (pre-transposed)
                    bm1_ref,    # (1, 64)  f32  mlp b1
                    wm2_ref,    # (1, 64)  f32  mlp W2 row vector
                    bm2_ref,    # (1, 1)   f32  mlp b2
                    out_ref,    # (Bp, 1)  f32
                    zin_ref,    # scratch ((S+1)*Bp, 8H) f32
                    *, seq_len, batch):
    H = HIDDEN
    G = 2 * H          # combined (layer-0 | layer-1) gate width = one full vreg of lanes
    Bp = batch

    # One-time prologue (off the serial recurrence): input projection + all biases for
    # every timestep, plus one trailing bias-only block for the skew epilogue.
    # Kept f32 for accuracy; it is a single well-shaped matmul.
    zin_ref[...] = (
        jnp.dot(x_ref[...], wihb_ref[...], preferred_element_type=jnp.float32)
        + bias_ref[...])

    def step(t, carry):
        h, c, m = carry                      # h, c: (Bp, 2H); m: (Bp, 8H) recurrent pre-act
        row = pl.multiple_of(t * Bp, SUBLANE)
        z = zin_ref[pl.ds(row, Bp), :] + m   # cols = [i0,i1 | f0,f1 | g0,g1 | o0,o1]
        # Every slice below is a full (Bp, 128) vreg -> no cross-lane rolls.
        sif = jax.nn.sigmoid(z[:, 0:2 * G])          # [i | f] for both layers
        g_t = jnp.tanh(z[:, 2 * G:3 * G])            # g
        o_t = jax.nn.sigmoid(z[:, 3 * G:4 * G])      # o
        c = sif[:, G:2 * G] * c + sif[:, 0:G] * g_t  # f*c + i*g        (f32)
        h = o_t * jnp.tanh(c)                        # o*tanh(c)        (f32)
        # Single fused recurrent matmul for both layers (bf16 operands, f32 accumulate):
        #   cols 0:4H  <- h0 @ Whh0              (layer-0 recurrence, consumed at t+1)
        #   cols 4H:8H <- h0 @ Wih1 + h1 @ Whh1  (layer-1 pre-activation, consumed at t+1)
        m = jnp.dot(h.astype(jnp.bfloat16), wbig_ref[...],
                    preferred_element_type=jnp.float32)
        return h, c, m

    hc0 = jnp.zeros((Bp, G), jnp.float32)
    m0 = jnp.broadcast_to(mcorr_ref[...], (Bp, 4 * G))  # cancels b1_g at t == 0 so the
    #                                                      spurious layer-1 "t=-1" step is 0
    # S+1 iterations: layer-1 lags layer-0 by one step (skew); the extra bias-only
    # iteration produces h1[S-1] (its trailing matmul is dead and off the critical path).
    h, _, _ = lax.fori_loop(0, seq_len + 1, step, (hc0, hc0, m0),
                            unroll=True if seq_len + 1 <= 32 else 8)

    # MLP head on the final layer-1 hidden state. Dropout is identity in eval mode.
    h1 = h[:, H:2 * H]
    hid = jnp.dot(h1.astype(jnp.bfloat16), wm1_ref[...],
                  preferred_element_type=jnp.float32) + bm1_ref[...]
    hid = jnp.maximum(hid, 0.0)
    # Final (64 -> 1) projection as a VPU multiply + lane reduction (avoid an N=1 MXU op).
    out_ref[...] = jnp.sum(hid * wm2_ref[...], axis=-1, keepdims=True) + bm2_ref[...]


@jax.jit
def ts_rnn2_forward(x, params):
    """x: (batch, seq, NUM_INP) float32 -> (batch,) float32 (eval-mode forward)."""
    B, S, I = x.shape
    H = HIDDEN
    assert I == NUM_INP
    (wihb, bias, mcorr, wbig, wm1, bm1, wm2, bm2) = params

    # Pad batch to a full f32 sublane so every vreg / MXU row carries real work.
    Bp = max(SUBLANE, ((B + SUBLANE - 1) // SUBLANE) * SUBLANE)
    if Bp != B:
        x = jnp.pad(x, ((0, Bp - B), (0, 0), (0, 0)))
    # Seq-major plus one zero "epilogue" timestep for the skewed recurrence;
    # row t*Bp + b of x_flat corresponds to (time t, batch b).
    x_seq = jnp.transpose(x, (1, 0, 2))
    x_seq = jnp.concatenate([x_seq, jnp.zeros((1, Bp, I), x.dtype)], axis=0)
    x_flat = x_seq.reshape((S + 1) * Bp, I)

    vmem = pl.BlockSpec(memory_space=pltpu.MemorySpace.VMEM)
    kernel = functools.partial(_ts_rnn2_kernel, seq_len=S, batch=Bp)
    out = pl.pallas_call(
        kernel,
        out_shape=jax.ShapeDtypeStruct((Bp, 1), jnp.float32),
        in_specs=[vmem] * 9,
        out_specs=vmem,
        scratch_shapes=[pltpu.VMEM(((S + 1) * Bp, 8 * H), jnp.float32)],
    )(x_flat, wihb, bias, mcorr, wbig, wm1, bm1, wm2, bm2)
    return out[:B, 0]  # matches torch .squeeze() for batch > 1


def make_weights(key):
    """Deterministic synthetic torch-layout weights (LSTM(8,64,2) + MLP).
    Weights that will be fed to the MXU as bf16 are pre-rounded to bf16 values."""
    H, I = HIDDEN, NUM_INP
    keys = iter(jax.random.split(key, 12))
    s = float(H) ** -0.5
    s2 = 64.0 ** -0.5

    def u(shape, bound):
        return jax.random.uniform(next(keys), shape, jnp.float32, -bound, bound)

    def r16(w):  # round-trip through bf16 so kernel and reference use identical weights
        return w.astype(jnp.bfloat16).astype(jnp.float32)

    return dict(
        wih0=u((4 * H, I), s),
        whh0=r16(u((4 * H, H), s)),
        bih0=u((4 * H,), s), bhh0=u((4 * H,), s),
        wih1=r16(u((4 * H, H), s)),
        whh1=r16(u((4 * H, H), s)),
        bih1=u((4 * H,), s), bhh1=u((4 * H,), s),
        wm1=r16(u((64, H), s)), bm1=u((64,), s),
        wm2=u((1, 64), s2), bm2=u((1,), s2),
    )


def pack_params(w):
    """Pack torch-layout weights into the kernel's interleaved / fused layout."""
    H, I = HIDDEN, NUM_INP

    def interleave(a0, a1):
        # columns [gate0_l0, gate0_l1, gate1_l0, gate1_l1, ...] each 64 wide
        r = a0.shape[0]
        return jnp.stack([a0.reshape(r, 4, H), a1.reshape(r, 4, H)],
                         axis=2).reshape(r, 8 * H)

    wih_big = interleave(w["wih0"].T, jnp.zeros((I, 4 * H), jnp.float32))
    bias_big = interleave((w["bih0"] + w["bhh0"])[None, :],
                          (w["bih1"] + w["bhh1"])[None, :])
    b1g = (w["bih1"] + w["bhh1"])[2 * H:3 * H]
    mcorr = jnp.zeros((1, 8 * H), jnp.float32).at[0, 5 * H:6 * H].set(-b1g)
    wbig = jnp.concatenate(
        [interleave(w["whh0"].T, w["wih1"].T),
         interleave(jnp.zeros((H, 4 * H), jnp.float32), w["whh1"].T)],
        axis=0).astype(jnp.bfloat16)
    return (wih_big, bias_big, mcorr, wbig,
            w["wm1"].T.astype(jnp.bfloat16), w["bm1"][None, :],
            w["wm2"], w["bm2"][None, :])


def ts_rnn2_reference(x, w):
    """Pure-JAX f32 reference of the same forward (eval-mode dropout)."""
    B, S, _ = x.shape
    H = HIDDEN
    wih0, whh0 = w["wih0"].T, w["whh0"].T
    wih1, whh1 = w["wih1"].T, w["whh1"].T
    b0 = (w["bih0"] + w["bhh0"])[None, :]
    b1 = (w["bih1"] + w["bhh1"])[None, :]
    h0 = c0 = h1 = c1 = jnp.zeros((B, H), jnp.float32)
    for t in range(S):
        z0 = x[:, t, :] @ wih0 + h0 @ whh0 + b0
        i, f, g, o = (jax.nn.sigmoid(z0[:, :H]), jax.nn.sigmoid(z0[:, H:2 * H]),
                      jnp.tanh(z0[:, 2 * H:3 * H]), jax.nn.sigmoid(z0[:, 3 * H:]))
        c0 = f * c0 + i * g
        h0 = o * jnp.tanh(c0)
        z1 = h0 @ wih1 + h1 @ whh1 + b1
        i, f, g, o = (jax.nn.sigmoid(z1[:, :H]), jax.nn.sigmoid(z1[:, H:2 * H]),
                      jnp.tanh(z1[:, 2 * H:3 * H]), jax.nn.sigmoid(z1[:, 3 * H:]))
        c1 = f * c1 + i * g
        h1 = o * jnp.tanh(c1)
    hid = jnp.maximum(h1 @ w["wm1"].T + w["bm1"][None, :], 0.0)
    out = hid @ w["wm2"].T + w["bm2"][None, :]
    return out[:, 0]


if __name__ == "__main__":
    key = jax.random.PRNGKey(0)
    k_x, k_w = jax.random.split(key)

    B, S = 2, 8
    x = jax.random.normal(k_x, (B, S, NUM_INP), jnp.float32)
    weights = make_weights(k_w)
    params = pack_params(weights)

    out = jax.block_until_ready(ts_rnn2_forward(x, params))
    ref = ts_rnn2_reference(x, weights)

    assert out.shape == (B,)
    assert jnp.allclose(out, ref, atol=2e-2, rtol=2e-2), (out, ref)
    print("KERNEL_OK")
</pallas_src>

<mosaic_0001>
module attributes {stable_mosaic.version = 11 : i64} {
  func.func @_ts_rnn2_kernel(%arg0: memref<72x8xf32, #tpu.memory_space<vmem>>, %arg1: memref<8x512xf32, #tpu.memory_space<vmem>>, %arg2: memref<1x512xf32, #tpu.memory_space<vmem>>, %arg3: memref<1x512xf32, #tpu.memory_space<vmem>>, %arg4: memref<128x512xbf16, #tpu.memory_space<vmem>>, %arg5: memref<64x64xbf16, #tpu.memory_space<vmem>>, %arg6: memref<1x64xf32, #tpu.memory_space<vmem>>, %arg7: memref<1x64xf32, #tpu.memory_space<vmem>>, %arg8: memref<1x1xf32, #tpu.memory_space<vmem>>, %arg9: memref<8x1xf32, #tpu.memory_space<vmem>>, %arg10: memref<72x512xf32, #tpu.memory_space<vmem>>) attributes {dimension_semantics = [], scalar_prefetch = 0 : i64, scratch_operands = 1 : i64, tpu.core_type = #tpu.core_type<tc>} {
    %c0 = arith.constant 0 : index
    %c0_0 = arith.constant 0 : index
    %0 = vector.load %arg0[%c0, %c0_0] : memref<72x8xf32, #tpu.memory_space<vmem>>, vector<72x8xf32>
    %c0_1 = arith.constant 0 : index
    %c0_2 = arith.constant 0 : index
    %1 = vector.load %arg1[%c0_1, %c0_2] : memref<8x512xf32, #tpu.memory_space<vmem>>, vector<8x512xf32>
    %cst = arith.constant dense<0.000000e+00> : vector<72x512xf32>
    %2 = tpu.matmul %0, %1, %cst {dimension_numbers = #tpu.dot_dimension_numbers<[1], [0], [0], [1], [0, 0, 1, 1], [], []>} : vector<72x8xf32>, vector<8x512xf32>, vector<72x512xf32> -> vector<72x512xf32>
    %c0_3 = arith.constant 0 : index
    %c0_4 = arith.constant 0 : index
    %3 = vector.load %arg2[%c0_3, %c0_4] : memref<1x512xf32, #tpu.memory_space<vmem>>, vector<1x512xf32>
    %4 = vector.broadcast %3 : vector<1x512xf32> to vector<72x512xf32>
    %5 = arith.addf %2, %4 : vector<72x512xf32>
    %c0_5 = arith.constant 0 : index
    %c0_6 = arith.constant 0 : index
    %6 = vector.load %arg10[%c0_5, %c0_6] : memref<72x512xf32, #tpu.memory_space<vmem>>, vector<72x512xf32>
    tpu.vector_store %arg10[%c0_5, %c0_6], %5 {strides = array<i32>} : memref<72x512xf32, #tpu.memory_space<vmem>>, vector<72x512xf32>,
    %cst_7 = arith.constant 0.000000e+00 : f32
    %7 = vector.broadcast %cst_7 : f32 to vector<8x128xf32>
    %c0_8 = arith.constant 0 : index
    %c0_9 = arith.constant 0 : index
    %8 = vector.load %arg3[%c0_8, %c0_9] : memref<1x512xf32, #tpu.memory_space<vmem>>, vector<1x512xf32>
    %9 = vector.shape_cast %8 : vector<1x512xf32> to vector<1x512xf32>
    %10 = vector.broadcast %9 : vector<1x512xf32> to vector<8x512xf32>
    %c0_i32 = arith.constant 0 : i32
    %c8_i32 = arith.constant 8 : i32
    %11 = arith.muli %c0_i32, %c8_i32 : i32
    %12 = tpu.assume_multiple %11, 8 : i32
    %13 = arith.index_cast %12 : i32 to index
    %c0_10 = arith.constant 0 : index
    %14 = vector.load %arg10[%13, %c0_10] : memref<72x512xf32, #tpu.memory_space<vmem>>, vector<8x512xf32>
    %15 = arith.addf %14, %10 : vector<8x512xf32>
    %16 = vector.extract_strided_slice %15 {offsets = [0, 0], sizes = [8, 256], strides = [1, 1]} : vector<8x512xf32> to vector<8x256xf32>
    %17 = arith.negf %16 : vector<8x256xf32>
    %18 = math.exp %17 : vector<8x256xf32>
    %cst_11 = arith.constant 1.000000e+00 : f32
    %19 = vector.broadcast %cst_11 : f32 to vector<8x256xf32>
    %20 = arith.addf %19, %18 : vector<8x256xf32>
    %21 = arith.divf %19, %20 : vector<8x256xf32>
    %22 = vector.extract_strided_slice %15 {offsets = [0, 256], sizes = [8, 128], strides = [1, 1]} : vector<8x512xf32> to vector<8x128xf32>
    %23 = math.tanh %22 : vector<8x128xf32>
    %24 = vector.extract_strided_slice %15 {offsets = [0, 384], sizes = [8, 128], strides = [1, 1]} : vector<8x512xf32> to vector<8x128xf32>
    %25 = arith.negf %24 : vector<8x128xf32>
    %26 = math.exp %25 : vector<8x128xf32>
    %cst_12 = arith.constant 1.000000e+00 : f32
    %27 = vector.broadcast %cst_12 : f32 to vector<8x128xf32>
    %28 = arith.addf %27, %26 : vector<8x128xf32>
    %29 = arith.divf %27, %28 : vector<8x128xf32>
    %30 = vector.extract_strided_slice %21 {offsets = [0, 128], sizes = [8, 128], strides = [1, 1]} : vector<8x256xf32> to vector<8x128xf32>
    %31 = arith.mulf %30, %7 : vector<8x128xf32>
    %32 = vector.extract_strided_slice %21 {offsets = [0, 0], sizes = [8, 128], strides = [1, 1]} : vector<8x256xf32> to vector<8x128xf32>
    %33 = arith.mulf %32, %23 : vector<8x128xf32>
    %34 = arith.addf %31, %33 : vector<8x128xf32>
    %35 = math.tanh %34 : vector<8x128xf32>
    %36 = arith.mulf %29, %35 : vector<8x128xf32>
    %37 = arith.truncf %36 : vector<8x128xf32> to vector<8x128xbf16>
    %c0_13 = arith.constant 0 : index
    %c0_14 = arith.constant 0 : index
    %38 = vector.load %arg4[%c0_13, %c0_14] : memref<128x512xbf16, #tpu.memory_space<vmem>>, vector<128x512xbf16>
    %cst_15 = arith.constant dense<0.000000e+00> : vector<8x512xf32>
    %39 = tpu.matmul %37, %38, %cst_15 {dimension_numbers = #tpu.dot_dimension_numbers<[1], [0], [0], [1], [0, 0, 1, 1], [], []>} : vector<8x128xbf16>, vector<128x512xbf16>, vector<8x512xf32> -> vector<8x512xf32>
    %c1_i32 = arith.constant 1 : i32
    %c8_i32_16 = arith.constant 8 : i32
    %40 = arith.muli %c1_i32, %c8_i32_16 : i32
    %41 = tpu.assume_multiple %40, 8 : i32
    %42 = arith.index_cast %41 : i32 to index
    %c0_17 = arith.constant 0 : index
    %43 = vector.load %arg10[%42, %c0_17] : memref<72x512xf32, #tpu.memory_space<vmem>>, vector<8x512xf32>
    %44 = arith.addf %43, %39 : vector<8x512xf32>
    %45 = vector.extract_strided_slice %44 {offsets = [0, 0], sizes = [8, 256], strides = [1, 1]} : vector<8x512xf32> to vector<8x256xf32>
    %46 = arith.negf %45 : vector<8x256xf32>
    %47 = math.exp %46 : vector<8x256xf32>
    %cst_18 = arith.constant 1.000000e+00 : f32
    %48 = vector.broadcast %cst_18 : f32 to vector<8x256xf32>
    %49 = arith.addf %48, %47 : vector<8x256xf32>
    %50 = arith.divf %48, %49 : vector<8x256xf32>
    %51 = vector.extract_strided_slice %44 {offsets = [0, 256], sizes = [8, 128], strides = [1, 1]} : vector<8x512xf32> to vector<8x128xf32>
    %52 = math.tanh %51 : vector<8x128xf32>
    %53 = vector.extract_strided_slice %44 {offsets = [0, 384], sizes = [8, 128], strides = [1, 1]} : vector<8x512xf32> to vector<8x128xf32>
    %54 = arith.negf %53 : vector<8x128xf32>
    %55 = math.exp %54 : vector<8x128xf32>
    %cst_19 = arith.constant 1.000000e+00 : f32
    %56 = vector.broadcast %cst_19 : f32 to vector<8x128xf32>
    %57 = arith.addf %56, %55 : vector<8x128xf32>
    %58 = arith.divf %56, %57 : vector<8x128xf32>
    %59 = vector.extract_strided_slice %50 {offsets = [0, 128], sizes = [8, 128], strides = [1, 1]} : vector<8x256xf32> to vector<8x128xf32>
    %60 = arith.mulf %59, %34 : vector<8x128xf32>
    %61 = vector.extract_strided_slice %50 {offsets = [0, 0], sizes = [8, 128], strides = [1, 1]} : vector<8x256xf32> to vector<8x128xf32>
    %62 = arith.mulf %61, %52 : vector<8x128xf32>
    %63 = arith.addf %60, %62 : vector<8x128xf32>
    %64 = math.tanh %63 : vector<8x128xf32>
    %65 = arith.mulf %58, %64 : vector<8x128xf32>
    %66 = arith.truncf %65 : vector<8x128xf32> to vector<8x128xbf16>
    %c0_20 = arith.constant 0 : index
    %c0_21 = arith.constant 0 : index
    %67 = vector.load %arg4[%c0_20, %c0_21] : memref<128x512xbf16, #tpu.memory_space<vmem>>, vector<128x512xbf16>
    %cst_22 = arith.constant dense<0.000000e+00> : vector<8x512xf32>
    %68 = tpu.matmul %66, %67, %cst_22 {dimension_numbers = #tpu.dot_dimension_numbers<[1], [0], [0], [1], [0, 0, 1, 1], [], []>} : vector<8x128xbf16>, vector<128x512xbf16>, vector<8x512xf32> -> vector<8x512xf32>
    %c2_i32 = arith.constant 2 : i32
    %c8_i32_23 = arith.constant 8 : i32
    %69 = arith.muli %c2_i32, %c8_i32_23 : i32
    %70 = tpu.assume_multiple %69, 8 : i32
    %71 = arith.index_cast %70 : i32 to index
    %c0_24 = arith.constant 0 : index
    %72 = vector.load %arg10[%71, %c0_24] : memref<72x512xf32, #tpu.memory_space<vmem>>, vector<8x512xf32>
    %73 = arith.addf %72, %68 : vector<8x512xf32>
    %74 = vector.extract_strided_slice %73 {offsets = [0, 0], sizes = [8, 256], strides = [1, 1]} : vector<8x512xf32> to vector<8x256xf32>
    %75 = arith.negf %74 : vector<8x256xf32>
    %76 = math.exp %75 : vector<8x256xf32>
    %cst_25 = arith.constant 1.000000e+00 : f32
    %77 = vector.broadcast %cst_25 : f32 to vector<8x256xf32>
    %78 = arith.addf %77, %76 : vector<8x256xf32>
    %79 = arith.divf %77, %78 : vector<8x256xf32>
    %80 = vector.extract_strided_slice %73 {offsets = [0, 256], sizes = [8, 128], strides = [1, 1]} : vector<8x512xf32> to vector<8x128xf32>
    %81 = math.tanh %80 : vector<8x128xf32>
    %82 = vector.extract_strided_slice %73 {offsets = [0, 384], sizes = [8, 128], strides = [1, 1]} : vector<8x512xf32> to vector<8x128xf32>
    %83 = arith.negf %82 : vector<8x128xf32>
    %84 = math.exp %83 : vector<8x128xf32>
    %cst_26 = arith.constant 1.000000e+00 : f32
    %85 = vector.broadcast %cst_26 : f32 to vector<8x128xf32>
    %86 = arith.addf %85, %84 : vector<8x128xf32>
    %87 = arith.divf %85, %86 : vector<8x128xf32>
    %88 = vector.extract_strided_slice %79 {offsets = [0, 128], sizes = [8, 128], strides = [1, 1]} : vector<8x256xf32> to vector<8x128xf32>
    %89 = arith.mulf %88, %63 : vector<8x128xf32>
    %90 = vector.extract_strided_slice %79 {offsets = [0, 0], sizes = [8, 128], strides = [1, 1]} : vector<8x256xf32> to vector<8x128xf32>
    %91 = arith.mulf %90, %81 : vector<8x128xf32>
    %92 = arith.addf %89, %91 : vector<8x128xf32>
    %93 = math.tanh %92 : vector<8x128xf32>
    %94 = arith.mulf %87, %93 : vector<8x128xf32>
    %95 = arith.truncf %94 : vector<8x128xf32> to vector<8x128xbf16>
    %c0_27 = arith.constant 0 : index
    %c0_28 = arith.constant 0 : index
    %96 = vector.load %arg4[%c0_27, %c0_28] : memref<128x512xbf16, #tpu.memory_space<vmem>>, vector<128x512xbf16>
    %cst_29 = arith.constant dense<0.000000e+00> : vector<8x512xf32>
    %97 = tpu.matmul %95, %96, %cst_29 {dimension_numbers = #tpu.dot_dimension_numbers<[1], [0], [0], [1], [0, 0, 1, 1], [], []>} : vector<8x128xbf16>, vector<128x512xbf16>, vector<8x512xf32> -> vector<8x512xf32>
    %c3_i32 = arith.constant 3 : i32
    %c8_i32_30 = arith.constant 8 : i32
    %98 = arith.muli %c3_i32, %c8_i32_30 : i32
    %99 = tpu.assume_multiple %98, 8 : i32
    %100 = arith.index_cast %99 : i32 to index
    %c0_31 = arith.constant 0 : index
    %101 = vector.load %arg10[%100, %c0_31] : memref<72x512xf32, #tpu.memory_space<vmem>>, vector<8x512xf32>
    %102 = arith.addf %101, %97 : vector<8x512xf32>
    %103 = vector.extract_strided_slice %102 {offsets = [0, 0], sizes = [8, 256], strides = [1, 1]} : vector<8x512xf32> to vector<8x256xf32>
    %104 = arith.negf %103 : vector<8x256xf32>
    %105 = math.exp %104 : vector<8x256xf32>
    %cst_32 = arith.constant 1.000000e+00 : f32
    %106 = vector.broadcast %cst_32 : f32 to vector<8x256xf32>
    %107 = arith.addf %106, %105 : vector<8x256xf32>
    %108 = arith.divf %106, %107 : vector<8x256xf32>
    %109 = vector.extract_strided_slice %102 {offsets = [0, 256], sizes = [8, 128], strides = [1, 1]} : vector<8x512xf32> to vector<8x128xf32>
    %110 = math.tanh %109 : vector<8x128xf32>
    %111 = vector.extract_strided_slice %102 {offsets = [0, 384], sizes = [8, 128], strides = [1, 1]} : vector<8x512xf32> to vector<8x128xf32>
    %112 = arith.negf %111 : vector<8x128xf32>
    %113 = math.exp %112 : vector<8x128xf32>
    %cst_33 = arith.constant 1.000000e+00 : f32
    %114 = vector.broadcast %cst_33 : f32 to vector<8x128xf32>
    %115 = arith.addf %114, %113 : vector<8x128xf32>
    %116 = arith.divf %114, %115 : vector<8x128xf32>
    %117 = vector.extract_strided_slice %108 {offsets = [0, 128], sizes = [8, 128], strides = [1, 1]} : vector<8x256xf32> to vector<8x128xf32>
    %118 = arith.mulf %117, %92 : vector<8x128xf32>
    %119 = vector.extract_strided_slice %108 {offsets = [0, 0], sizes = [8, 128], strides = [1, 1]} : vector<8x256xf32> to vector<8x128xf32>
    %120 = arith.mulf %119, %110 : vector<8x128xf32>
    %121 = arith.addf %118, %120 : vector<8x128xf32>
    %122 = math.tanh %121 : vector<8x128xf32>
    %123 = arith.mulf %116, %122 : vector<8x128xf32>
    %124 = arith.truncf %123 : vector<8x128xf32> to vector<8x128xbf16>
    %c0_34 = arith.constant 0 : index
    %c0_35 = arith.constant 0 : index
    %125 = vector.load %arg4[%c0_34, %c0_35] : memref<128x512xbf16, #tpu.memory_space<vmem>>, vector<128x512xbf16>
    %cst_36 = arith.constant dense<0.000000e+00> : vector<8x512xf32>
    %126 = tpu.matmul %124, %125, %cst_36 {dimension_numbers = #tpu.dot_dimension_numbers<[1], [0], [0], [1], [0, 0, 1, 1], [], []>} : vector<8x128xbf16>, vector<128x512xbf16>, vector<8x512xf32> -> vector<8x512xf32>
    %c4_i32 = arith.constant 4 : i32
    %c8_i32_37 = arith.constant 8 : i32
    %127 = arith.muli %c4_i32, %c8_i32_37 : i32
    %128 = tpu.assume_multiple %127, 8 : i32
    %129 = arith.index_cast %128 : i32 to index
    %c0_38 = arith.constant 0 : index
    %130 = vector.load %arg10[%129, %c0_38] : memref<72x512xf32, #tpu.memory_space<vmem>>, vector<8x512xf32>
    %131 = arith.addf %130, %126 : vector<8x512xf32>
    %132 = vector.extract_strided_slice %131 {offsets = [0, 0], sizes = [8, 256], strides = [1, 1]} : vector<8x512xf32> to vector<8x256xf32>
    %133 = arith.negf %132 : vector<8x256xf32>
    %134 = math.exp %133 : vector<8x256xf32>
    %cst_39 = arith.constant 1.000000e+00 : f32
    %135 = vector.broadcast %cst_39 : f32 to vector<8x256xf32>
    %136 = arith.addf %135, %134 : vector<8x256xf32>
    %137 = arith.divf %135, %136 : vector<8x256xf32>
    %138 = vector.extract_strided_slice %131 {offsets = [0, 256], sizes = [8, 128], strides = [1, 1]} : vector<8x512xf32> to vector<8x128xf32>
    %139 = math.tanh %138 : vector<8x128xf32>
    %140 = vector.extract_strided_slice %131 {offsets = [0, 384], sizes = [8, 128], strides = [1, 1]} : vector<8x512xf32> to vector<8x128xf32>
    %141 = arith.negf %140 : vector<8x128xf32>
    %142 = math.exp %141 : vector<8x128xf32>
    %cst_40 = arith.constant 1.000000e+00 : f32
    %143 = vector.broadcast %cst_40 : f32 to vector<8x128xf32>
    %144 = arith.addf %143, %142 : vector<8x128xf32>
    %145 = arith.divf %143, %144 : vector<8x128xf32>
    %146 = vector.extract_strided_slice %137 {offsets = [0, 128], sizes = [8, 128], strides = [1, 1]} : vector<8x256xf32> to vector<8x128xf32>
    %147 = arith.mulf %146, %121 : vector<8x128xf32>
    %148 = vector.extract_strided_slice %137 {offsets = [0, 0], sizes = [8, 128], strides = [1, 1]} : vector<8x256xf32> to vector<8x128xf32>
    %149 = arith.mulf %148, %139 : vector<8x128xf32>
    %150 = arith.addf %147, %149 : vector<8x128xf32>
    %151 = math.tanh %150 : vector<8x128xf32>
    %152 = arith.mulf %145, %151 : vector<8x128xf32>
    %153 = arith.truncf %152 : vector<8x128xf32> to vector<8x128xbf16>
    %c0_41 = arith.constant 0 : index
    %c0_42 = arith.constant 0 : index
    %154 = vector.load %arg4[%c0_41, %c0_42] : memref<128x512xbf16, #tpu.memory_space<vmem>>, vector<128x512xbf16>
    %cst_43 = arith.constant dense<0.000000e+00> : vector<8x512xf32>
    %155 = tpu.matmul %153, %154, %cst_43 {dimension_numbers = #tpu.dot_dimension_numbers<[1], [0], [0], [1], [0, 0, 1, 1], [], []>} : vector<8x128xbf16>, vector<128x512xbf16>, vector<8x512xf32> -> vector<8x512xf32>
    %c5_i32 = arith.constant 5 : i32
    %c8_i32_44 = arith.constant 8 : i32
    %156 = arith.muli %c5_i32, %c8_i32_44 : i32
    %157 = tpu.assume_multiple %156, 8 : i32
    %158 = arith.index_cast %157 : i32 to index
    %c0_45 = arith.constant 0 : index
    %159 = vector.load %arg10[%158, %c0_45] : memref<72x512xf32, #tpu.memory_space<vmem>>, vector<8x512xf32>
    %160 = arith.addf %159, %155 : vector<8x512xf32>
    %161 = vector.extract_strided_slice %160 {offsets = [0, 0], sizes = [8, 256], strides = [1, 1]} : vector<8x512xf32> to vector<8x256xf32>
    %162 = arith.negf %161 : vector<8x256xf32>
    %163 = math.exp %162 : vector<8x256xf32>
    %cst_46 = arith.constant 1.000000e+00 : f32
    %164 = vector.broadcast %cst_46 : f32 to vector<8x256xf32>
    %165 = arith.addf %164, %163 : vector<8x256xf32>
    %166 = arith.divf %164, %165 : vector<8x256xf32>
    %167 = vector.extract_strided_slice %160 {offsets = [0, 256], sizes = [8, 128], strides = [1, 1]} : vector<8x512xf32> to vector<8x128xf32>
    %168 = math.tanh %167 : vector<8x128xf32>
    %169 = vector.extract_strided_slice %160 {offsets = [0, 384], sizes = [8, 128], strides = [1, 1]} : vector<8x512xf32> to vector<8x128xf32>
    %170 = arith.negf %169 : vector<8x128xf32>
    %171 = math.exp %170 : vector<8x128xf32>
    %cst_47 = arith.constant 1.000000e+00 : f32
    %172 = vector.broadcast %cst_47 : f32 to vector<8x128xf32>
    %173 = arith.addf %172, %171 : vector<8x128xf32>
    %174 = arith.divf %172, %173 : vector<8x128xf32>
    %175 = vector.extract_strided_slice %166 {offsets = [0, 128], sizes = [8, 128], strides = [1, 1]} : vector<8x256xf32> to vector<8x128xf32>
    %176 = arith.mulf %175, %150 : vector<8x128xf32>
    %177 = vector.extract_strided_slice %166 {offsets = [0, 0], sizes = [8, 128], strides = [1, 1]} : vector<8x256xf32> to vector<8x128xf32>
    %178 = arith.mulf %177, %168 : vector<8x128xf32>
    %179 = arith.addf %176, %178 : vector<8x128xf32>
    %180 = math.tanh %179 : vector<8x128xf32>
    %181 = arith.mulf %174, %180 : vector<8x128xf32>
    %182 = arith.truncf %181 : vector<8x128xf32> to vector<8x128xbf16>
    %c0_48 = arith.constant 0 : index
    %c0_49 = arith.constant 0 : index
    %183 = vector.load %arg4[%c0_48, %c0_49] : memref<128x512xbf16, #tpu.memory_space<vmem>>, vector<128x512xbf16>
    %cst_50 = arith.constant dense<0.000000e+00> : vector<8x512xf32>
    %184 = tpu.matmul %182, %183, %cst_50 {dimension_numbers = #tpu.dot_dimension_numbers<[1], [0], [0], [1], [0, 0, 1, 1], [], []>} : vector<8x128xbf16>, vector<128x512xbf16>, vector<8x512xf32> -> vector<8x512xf32>
    %c6_i32 = arith.constant 6 : i32
    %c8_i32_51 = arith.constant 8 : i32
    %185 = arith.muli %c6_i32, %c8_i32_51 : i32
    %186 = tpu.assume_multiple %185, 8 : i32
    %187 = arith.index_cast %186 : i32 to index
    %c0_52 = arith.constant 0 : index
    %188 = vector.load %arg10[%187, %c0_52] : memref<72x512xf32, #tpu.memory_space<vmem>>, vector<8x512xf32>
    %189 = arith.addf %188, %184 : vector<8x512xf32>
    %190 = vector.extract_strided_slice %189 {offsets = [0, 0], sizes = [8, 256], strides = [1, 1]} : vector<8x512xf32> to vector<8x256xf32>
    %191 = arith.negf %190 : vector<8x256xf32>
    %192 = math.exp %191 : vector<8x256xf32>
    %cst_53 = arith.constant 1.000000e+00 : f32
    %193 = vector.broadcast %cst_53 : f32 to vector<8x256xf32>
    %194 = arith.addf %193, %192 : vector<8x256xf32>
    %195 = arith.divf %193, %194 : vector<8x256xf32>
    %196 = vector.extract_strided_slice %189 {offsets = [0, 256], sizes = [8, 128], strides = [1, 1]} : vector<8x512xf32> to vector<8x128xf32>
    %197 = math.tanh %196 : vector<8x128xf32>
    %198 = vector.extract_strided_slice %189 {offsets = [0, 384], sizes = [8, 128], strides = [1, 1]} : vector<8x512xf32> to vector<8x128xf32>
    %199 = arith.negf %198 : vector<8x128xf32>
    %200 = math.exp %199 : vector<8x128xf32>
    %cst_54 = arith.constant 1.000000e+00 : f32
    %201 = vector.broadcast %cst_54 : f32 to vector<8x128xf32>
    %202 = arith.addf %201, %200 : vector<8x128xf32>
    %203 = arith.divf %201, %202 : vector<8x128xf32>
    %204 = vector.extract_strided_slice %195 {offsets = [0, 128], sizes = [8, 128], strides = [1, 1]} : vector<8x256xf32> to vector<8x128xf32>
    %205 = arith.mulf %204, %179 : vector<8x128xf32>
    %206 = vector.extract_strided_slice %195 {offsets = [0, 0], sizes = [8, 128], strides = [1, 1]} : vector<8x256xf32> to vector<8x128xf32>
    %207 = arith.mulf %206, %197 : vector<8x128xf32>
    %208 = arith.addf %205, %207 : vector<8x128xf32>
    %209 = math.tanh %208 : vector<8x128xf32>
    %210 = arith.mulf %203, %209 : vector<8x128xf32>
    %211 = arith.truncf %210 : vector<8x128xf32> to vector<8x128xbf16>
    %c0_55 = arith.constant 0 : index
    %c0_56 = arith.constant 0 : index
    %212 = vector.load %arg4[%c0_55, %c0_56] : memref<128x512xbf16, #tpu.memory_space<vmem>>, vector<128x512xbf16>
    %cst_57 = arith.constant dense<0.000000e+00> : vector<8x512xf32>
    %213 = tpu.matmul %211, %212, %cst_57 {dimension_numbers = #tpu.dot_dimension_numbers<[1], [0], [0], [1], [0, 0, 1, 1], [], []>} : vector<8x128xbf16>, vector<128x512xbf16>, vector<8x512xf32> -> vector<8x512xf32>
    %c7_i32 = arith.constant 7 : i32
    %c8_i32_58 = arith.constant 8 : i32
    %214 = arith.muli %c7_i32, %c8_i32_58 : i32
    %215 = tpu.assume_multiple %214, 8 : i32
    %216 = arith.index_cast %215 : i32 to index
    %c0_59 = arith.constant 0 : index
    %217 = vector.load %arg10[%216, %c0_59] : memref<72x512xf32, #tpu.memory_space<vmem>>, vector<8x512xf32>
    %218 = arith.addf %217, %213 : vector<8x512xf32>
    %219 = vector.extract_strided_slice %218 {offsets = [0, 0], sizes = [8, 256], strides = [1, 1]} : vector<8x512xf32> to vector<8x256xf32>
    %220 = arith.negf %219 : vector<8x256xf32>
    %221 = math.exp %220 : vector<8x256xf32>
    %cst_60 = arith.constant 1.000000e+00 : f32
    %222 = vector.broadcast %cst_60 : f32 to vector<8x256xf32>
    %223 = arith.addf %222, %221 : vector<8x256xf32>
    %224 = arith.divf %222, %223 : vector<8x256xf32>
    %225 = vector.extract_strided_slice %218 {offsets = [0, 256], sizes = [8, 128], strides = [1, 1]} : vector<8x512xf32> to vector<8x128xf32>
    %226 = math.tanh %225 : vector<8x128xf32>
    %227 = vector.extract_strided_slice %218 {offsets = [0, 384], sizes = [8, 128], strides = [1, 1]} : vector<8x512xf32> to vector<8x128xf32>
    %228 = arith.negf %227 : vector<8x128xf32>
    %229 = math.exp %228 : vector<8x128xf32>
    %cst_61 = arith.constant 1.000000e+00 : f32
    %230 = vector.broadcast %cst_61 : f32 to vector<8x128xf32>
    %231 = arith.addf %230, %229 : vector<8x128xf32>
    %232 = arith.divf %230, %231 : vector<8x128xf32>
    %233 = vector.extract_strided_slice %224 {offsets = [0, 128], sizes = [8, 128], strides = [1, 1]} : vector<8x256xf32> to vector<8x128xf32>
    %234 = arith.mulf %233, %208 : vector<8x128xf32>
    %235 = vector.extract_strided_slice %224 {offsets = [0, 0], sizes = [8, 128], strides = [1, 1]} : vector<8x256xf32> to vector<8x128xf32>
    %236 = arith.mulf %235, %226 : vector<8x128xf32>
    %237 = arith.addf %234, %236 : vector<8x128xf32>
    %238 = math.tanh %237 : vector<8x128xf32>
    %239 = arith.mulf %232, %238 : vector<8x128xf32>
    %240 = arith.truncf %239 : vector<8x128xf32> to vector<8x128xbf16>
    %c0_62 = arith.constant 0 : index
    %c0_63 = arith.constant 0 : index
    %241 = vector.load %arg4[%c0_62, %c0_63] : memref<128x512xbf16, #tpu.memory_space<vmem>>, vector<128x512xbf16>
    %cst_64 = arith.constant dense<0.000000e+00> : vector<8x512xf32>
    %242 = tpu.matmul %240, %241, %cst_64 {dimension_numbers = #tpu.dot_dimension_numbers<[1], [0], [0], [1], [0, 0, 1, 1], [], []>} : vector<8x128xbf16>, vector<128x512xbf16>, vector<8x512xf32> -> vector<8x512xf32>
    %c8_i32_65 = arith.constant 8 : i32
    %c8_i32_66 = arith.constant 8 : i32
    %243 = arith.muli %c8_i32_65, %c8_i32_66 : i32
    %244 = tpu.assume_multiple %243, 8 : i32
    %245 = arith.index_cast %244 : i32 to index
    %c0_67 = arith.constant 0 : index
    %246 = vector.load %arg10[%245, %c0_67] : memref<72x512xf32, #tpu.memory_space<vmem>>, vector<8x512xf32>
    %247 = arith.addf %246, %242 : vector<8x512xf32>
    %248 = vector.extract_strided_slice %247 {offsets = [0, 0], sizes = [8, 256], strides = [1, 1]} : vector<8x512xf32> to vector<8x256xf32>
    %249 = arith.negf %248 : vector<8x256xf32>
    %250 = math.exp %249 : vector<8x256xf32>
    %cst_68 = arith.constant 1.000000e+00 : f32
    %251 = vector.broadcast %cst_68 : f32 to vector<8x256xf32>
    %252 = arith.addf %251, %250 : vector<8x256xf32>
    %253 = arith.divf %251, %252 : vector<8x256xf32>
    %254 = vector.extract_strided_slice %247 {offsets = [0, 256], sizes = [8, 128], strides = [1, 1]} : vector<8x512xf32> to vector<8x128xf32>
    %255 = math.tanh %254 : vector<8x128xf32>
    %256 = vector.extract_strided_slice %247 {offsets = [0, 384], sizes = [8, 128], strides = [1, 1]} : vector<8x512xf32> to vector<8x128xf32>
    %257 = arith.negf %256 : vector<8x128xf32>
    %258 = math.exp %257 : vector<8x128xf32>
    %cst_69 = arith.constant 1.000000e+00 : f32
    %259 = vector.broadcast %cst_69 : f32 to vector<8x128xf32>
    %260 = arith.addf %259, %258 : vector<8x128xf32>
    %261 = arith.divf %259, %260 : vector<8x128xf32>
    %262 = vector.extract_strided_slice %253 {offsets = [0, 128], sizes = [8, 128], strides = [1, 1]} : vector<8x256xf32> to vector<8x128xf32>
    %263 = arith.mulf %262, %237 : vector<8x128xf32>
    %264 = vector.extract_strided_slice %253 {offsets = [0, 0], sizes = [8, 128], strides = [1, 1]} : vector<8x256xf32> to vector<8x128xf32>
    %265 = arith.mulf %264, %255 : vector<8x128xf32>
    %266 = arith.addf %263, %265 : vector<8x128xf32>
    %267 = math.tanh %266 : vector<8x128xf32>
    %268 = arith.mulf %261, %267 : vector<8x128xf32>
    %269 = arith.truncf %268 : vector<8x128xf32> to vector<8x128xbf16>
    %c0_70 = arith.constant 0 : index
    %c0_71 = arith.constant 0 : index
    %270 = vector.load %arg4[%c0_70, %c0_71] : memref<128x512xbf16, #tpu.memory_space<vmem>>, vector<128x512xbf16>
    %cst_72 = arith.constant dense<0.000000e+00> : vector<8x512xf32>
    %271 = tpu.matmul %269, %270, %cst_72 {dimension_numbers = #tpu.dot_dimension_numbers<[1], [0], [0], [1], [0, 0, 1, 1], [], []>} : vector<8x128xbf16>, vector<128x512xbf16>, vector<8x512xf32> -> vector<8x512xf32>
    %c9_i32 = arith.constant 9 : i32
    %272 = vector.extract_strided_slice %268 {offsets = [0, 64], sizes = [8, 64], strides = [1, 1]} : vector<8x128xf32> to vector<8x64xf32>
    %273 = arith.truncf %272 : vector<8x64xf32> to vector<8x64xbf16>
    %c0_73 = arith.constant 0 : index
    %c0_74 = arith.constant 0 : index
    %274 = vector.load %arg5[%c0_73, %c0_74] : memref<64x64xbf16, #tpu.memory_space<vmem>>, vector<64x64xbf16>
    %cst_75 = arith.constant dense<0.000000e+00> : vector<8x64xf32>
    %275 = tpu.matmul %273, %274, %cst_75 {dimension_numbers = #tpu.dot_dimension_numbers<[1], [0], [0], [1], [0, 0, 1, 1], [], []>} : vector<8x64xbf16>, vector<64x64xbf16>, vector<8x64xf32> -> vector<8x64xf32>
    %c0_76 = arith.constant 0 : index
    %c0_77 = arith.constant 0 : index
    %276 = vector.load %arg6[%c0_76, %c0_77] : memref<1x64xf32, #tpu.memory_space<vmem>>, vector<1x64xf32>
    %277 = vector.broadcast %276 : vector<1x64xf32> to vector<8x64xf32>
    %278 = arith.addf %275, %277 : vector<8x64xf32>
    %cst_78 = arith.constant 0.000000e+00 : f32
    %279 = vector.broadcast %cst_78 : f32 to vector<8x64xf32>
    %280 = arith.maximumf %278, %279 : vector<8x64xf32>
    %c0_79 = arith.constant 0 : index
    %c0_80 = arith.constant 0 : index
    %281 = vector.load %arg7[%c0_79, %c0_80] : memref<1x64xf32, #tpu.memory_space<vmem>>, vector<1x64xf32>
    %282 = vector.broadcast %281 : vector<1x64xf32> to vector<8x64xf32>
    %283 = arith.mulf %280, %282 : vector<8x64xf32>
    %cst_81 = arith.constant dense<0.000000e+00> : vector<8xf32>
    %284 = vector.multi_reduction <add>, %283, %cst_81 [1] : vector<8x64xf32> to vector<8xf32>
    %285 = vector.shape_cast %284 : vector<8xf32> to vector<8x1xf32>
    %c0_82 = arith.constant 0 : index
    %c0_83 = arith.constant 0 : index
    %286 = vector.load %arg8[%c0_82, %c0_83] : memref<1x1xf32, #tpu.memory_space<vmem>>, vector<1x1xf32>
    %287 = vector.broadcast %286 : vector<1x1xf32> to vector<8x1xf32>
    %288 = arith.addf %285, %287 : vector<8x1xf32>
    %c0_84 = arith.constant 0 : index
    %c0_85 = arith.constant 0 : index
    %289 = vector.load %arg9[%c0_84, %c0_85] : memref<8x1xf32, #tpu.memory_space<vmem>>, vector<8x1xf32>
    tpu.vector_store %arg9[%c0_84, %c0_85], %288 {strides = array<i32>} : memref<8x1xf32, #tpu.memory_space<vmem>>, vector<8x1xf32>,
    return
  }
}

</mosaic_0001>

<bundles_post_ra>
// kernel: ts_rnn2_forward.1
= control target key start
LH: loop header
LB: loop body
LE: loop exit
PB: predicated region body
PF: predicated region fallthrough
CT: control target
= control target key end

     0   :  { %vm58_vm0 = vcmask 64512   ;;  %s2948_s1 = inlined_call_operand.vmem [shape: f32[8,512], index: 1, kind: input, shape index: {}]   ;;  %s2949_s0 = inlined_call_operand.vmem [shape: f32[72,8], index: 0, kind: input, shape index: {}]   ;;  %s2950_s4 = inlined_call_operand.vmem [shape: bf16[128,512], index: 4, kind: input, shape index: {}]   ;;  %s2951_s2 = inlined_call_operand.vmem [shape: f32[1,512], index: 2, kind: input, shape index: {}]   ;;  %s2952_s3 = inlined_call_operand.vmem [shape: f32[1,512], index: 3, kind: input, shape index: {}]   ;;  %s2953_s5 = inlined_call_operand.vmem [shape: bf16[64,64], index: 5, kind: input, shape index: {}]   ;;  %s2954_s6 = inlined_call_operand.vmem [shape: f32[1,64], index: 6, kind: input, shape index: {}]   ;;  %s2955_s7 = inlined_call_operand.vmem [shape: f32[1,64], index: 7, kind: input, shape index: {}]   ;;  %s2956_s8 = inlined_call_operand.<no memory space> [shape: f32[1,1], index: 8, kind: input, shape index: {}]   ;;  %s2957_s9 = inlined_call_operand.vmem [shape: f32[8,1], index: 9, kind: output, shape index: {}]  }
   0x1   :  { %v44_v0 = vld [vmem:[%s2948_s1] sm:$0xff]  ;;  %v47_v1 = vld [vmem:[%s2948_s1 + $0x18] sm:$0xff]  ;;  %v45_v4 = vld [vmem:[%s2948_s1 + $0x8] sm:$0xff] }
   0x2   :  { %v35_v2 = vld [vmem:[%s2949_s0] sm:$0xff]  ;;  %101 = vmatpush.msra.mxu0 %v44_v0  ;;  %1919 = vmatpush.msra.mxu1 %v44_v0  ;;  %v46_v5 = vld [vmem:[%s2948_s1 + $0x10] sm:$0xff]  ;;  %v1912_v8 = vld [vmem:[%s2950_s4 + $0xec] sm:$0xf] }
   0x3   :  { %v2131_v3 = vld [vmem:[%s2949_s0 + $0x40] sm:$0xff]  ;;  %233 = vmatpush.msra.mxu3 %v47_v1  ;;  %1675 = vmatmul.msk.f32.vlgmr.msra.gmra.mxu0 %vm58_vm0, %v35_v2  ;;  %v1830_v7 = vld [vmem:[%s2950_s4 + $0xf0] sm:$0xf0]  ;;  %v1838_v10 = vld [vmem:[%s2950_s4 + $0xf8] sm:$0xf0] }
   0x4   :  { %v1911_v6 = vld [vmem:[%s2950_s4 + $0xe4] sm:$0xf]  ;;  %1683 = vmatmul.msk.f32.vlgmr.msra.gmra.mxu1 %vm58_vm0, %v2131_v3  ;;  %1702 = vmatmul.msk.f32.vlgmr.msra.gmra.mxu3 %vm58_vm0, %v35_v2  ;;  %v1828_v11 = vld [vmem:[%s2950_s4 + $0xe0] sm:$0xf]  ;;  %v2160_v12 = vor.u32 %v1912_v8, %v1838_v10  ;;  %v1913_v13 = vld [vmem:[%s2950_s4 + $0xec] sm:$0xf0] }
   0x5   :  { %v2152_v9 = vor.u32 %v1911_v6, %v1830_v7  ;;  %145 = vmatpush.msrb.mxu1 %v45_v4  ;;  %189 = vmatpush.msra.mxu2 %v46_v5  ;;  %v1907_v14 = vld [vmem:[%s2950_s4 + $0xc4] sm:$0xf]  ;;  %v1814_v15 = vld [vmem:[%s2950_s4 + $0xd0] sm:$0xf0]  ;;  %v2173_v16 = vor.u32 %v1913_v13, %v1828_v11  ;;  %v1908_v18 = vld [vmem:[%s2950_s4 + $0xcc] sm:$0xf] }
   0x6   :  { %1693 = vmatmul.msk.f32.vlgmr.msra.gmra.mxu2 %vm58_vm0, %v35_v2  ;;  %v2175_v17 = vor.u32 %v1907_v14, %v1814_v15  ;;  %v1822_v19 = vld [vmem:[%s2950_s4 + $0xd8] sm:$0xf0]  ;;  %v1836_v20 = vld [vmem:[%s2950_s4 + $0xe8] sm:$0xf]  ;;  %614 = vmatpush.bf16.msrb.mxu3 %v2160_v12  ;;  %v1914_v22 = vld [vmem:[%s2950_s4 + $0xf4] sm:$0xf0] }
   0x7   :  { %588 = vmatpush.bf16.msra.mxu1 %v2152_v9  ;;  %v2187_v21 = vor.u32 %v1908_v18, %v1822_v19  ;;  %575 = vmatpush.bf16.msrb.mxu0 %v2173_v16  ;;  %v2193_v23 = vor.u32 %v1914_v22, %v1836_v20  ;;  %v36_v24 = vld [vmem:[%s2949_s0 + $0x8] sm:$0xff]  ;;  %v37_v25 = vld [vmem:[%s2949_s0 + $0x10] sm:$0xff]  ;;  %v38_v26 = vld [vmem:[%s2949_s0 + $0x18] sm:$0xff] }
   0x8   :  { %v39_v27 = vld [vmem:[%s2949_s0 + $0x20] sm:$0xff]  ;;  %v40_v28 = vld [vmem:[%s2949_s0 + $0x28] sm:$0xff]  ;;  %v1909_v32 = vld [vmem:[%s2950_s4 + $0xcc] sm:$0xf0] }
   0x9   :  { %601 = vmatpush.bf16.msrb.mxu2 %v2193_v23  ;;  %v2233_v29 = vld [vmem:[%s2951_s2] sm:$0xf]  ;;  %v1903_v33 = vld [vmem:[%s2950_s4 + $0xa4] sm:$0xf]  ;;  %v1798_v35 = vld [vmem:[%s2950_s4 + $0xb0] sm:$0xf0] }
   0xa   :  { %615 = vmatpush.bf16.msrb.mxu3 %v2187_v21  ;;  %v2238_v30 = vld [vmem:[%s2952_s3] sm:$0xf]  ;;  %v1820_v36 = vld [vmem:[%s2950_s4 + $0xc8] sm:$0xf]  ;;  %v1910_v37 = vld [vmem:[%s2950_s4 + $0xd4] sm:$0xf0]  ;;  %v2267_v39 = vor.u32 %v1903_v33, %v1798_v35 }
   0xb   :  { %589 = vmatpush.bf16.msra.mxu1 %v2175_v17  ;;  %1676 = vmatmul.msk.f32.gmra.mxu0 %vm58_vm0, %v36_v24  ;;  %v1812_v31 = vld [vmem:[%s2950_s4 + $0xc0] sm:$0xf]  ;;  %v2265_v38 = vperm.slane %v2233_v29, 0  ;;  %v2269_v40 = vor.u32 %v1910_v37, %v1820_v36  ;;  %v300_v41 = vperm.slane %v2238_v30, 0  ;;  %v1904_v42 = vld [vmem:[%s2950_s4 + $0xac] sm:$0xf] }
   0xc   :  { %1684 = vmatmul.msk.f32.vlgmr.msrb.gmra.mxu1 %vm58_vm0, %v35_v2  ;;  %1703 = vmatmul.msk.f32.gmra.mxu3 %vm58_vm0, %v36_v24  ;;  %v2253_v34 = vor.u32 %v1909_v32, %v1812_v31  ;;  %v1806_v43 = vld [vmem:[%s2950_s4 + $0xb8] sm:$0xf0]  ;;  %v1796_v46 = vld [vmem:[%s2950_s4 + $0xa0] sm:$0xf]  ;;  %v1905_v47 = vld [vmem:[%s2950_s4 + $0xac] sm:$0xf0] }
   0xd   :  { %602 = vmatpush.bf16.msrb.mxu2 %v2269_v40  ;;  %v2281_v45 = vor.u32 %v1904_v42, %v1806_v43  ;;  %v1804_v48 = vld [vmem:[%s2950_s4 + $0xa8] sm:$0xf]  ;;  %v2295_v51 = vor.u32 %v1905_v47, %v1796_v46  ;;  %v1906_v52 = vld [vmem:[%s2950_s4 + $0xb4] sm:$0xf0]  ;;  %v41_v53 = vld [vmem:[%s2949_s0 + $0x30] sm:$0xff]  ;;  %v2308_v56 = vperm.slane %v2233_v29, 3 }
   0xe   :  { %1694 = vmatmul.msk.f32.gmra.mxu2 %vm58_vm0, %v36_v24  ;;  %576 = vmatpush.bf16.msrb.mxu0 %v2253_v34  ;;  %v2304_v54 = vor.u32 %v1906_v52, %v1804_v48  ;;  %v303_v57 = vperm.slane %v2238_v30, 3  ;;  %v2312_v58 = vperm.slane %v2233_v29, 1  ;;  %v1899_v59 = vld [vmem:[%s2950_s4 + $0x84] sm:$0xf]  ;;  %v1782_v60 = vld [vmem:[%s2950_s4 + $0x90] sm:$0xf0] }
   0xf   :  { %590 = vmatpush.bf16.msra.mxu1 %v2267_v39  ;;  %616 = vmatpush.bf16.msrb.mxu3 %v2281_v45  ;;  %v1780_v61 = vld [vmem:[%s2950_s4 + $0x80] sm:$0xf]  ;;  %v2327_v63 = vor.u32 %v1899_v59, %v1782_v60  ;;  %v1901_v0 = vld [vmem:[%s2950_s4 + $0x8c] sm:$0xf0]  ;;  %v1900_v1 = vld [vmem:[%s2950_s4 + $0x8c] sm:$0xf] }
  0x10   :  { %v2336_v2 = vor.u32 %v1901_v0, %v1780_v61  ;;  %v1790_v4 = vld [vmem:[%s2950_s4 + $0x98] sm:$0xf0]  ;;  %v1895_v5 = vld [vmem:[%s2950_s4 + $0x64] sm:$0xf]  ;;  %v1766_v6 = vld [vmem:[%s2950_s4 + $0x70] sm:$0xf0] }
  0x11   :  { %603 = vmatpush.bf16.msrb.mxu2 %v2304_v54  ;;  %v301_v8 = vperm.slane %v2238_v30, 1  ;;  %v2349_v10 = vor.u32 %v1900_v1, %v1790_v4  ;;  %v2351_v11 = vor.u32 %v1895_v5, %v1766_v6  ;;  %v1788_v13 = vld [vmem:[%s2950_s4 + $0x88] sm:$0xf]  ;;  %v1902_v14 = vld [vmem:[%s2950_s4 + $0x94] sm:$0xf0] }
  0x12   :  { %577 = vmatpush.bf16.msrb.mxu0 %v2295_v51  ;;  %v1764_v18 = vld [vmem:[%s2950_s4 + $0x60] sm:$0xf]  ;;  %v1897_v19 = vld [vmem:[%s2950_s4 + $0x6c] sm:$0xf0]  ;;  %v1896_v20 = vld [vmem:[%s2950_s4 + $0x6c] sm:$0xf]  ;;  %v2370_v22 = vor.u32 %v1902_v14, %v1788_v13 }
  0x13   :  { %1677 = vmatmul.msk.f32.gmra.mxu0 %vm58_vm0, %v37_v25  ;;  %591 = vmatpush.bf16.msra.mxu1 %v2327_v63  ;;  %v42_v35 = vld [vmem:[%s2949_s0 + $0x38] sm:$0xff]  ;;  %v1891_v42 = vld [vmem:[%s2950_s4 + $0x44] sm:$0xf]  ;;  %v1750_v43 = vld [vmem:[%s2950_s4 + $0x50] sm:$0xf0] }
  0x14   :  { %1685 = vmatmul.msk.f32.gmra.mxu1 %vm58_vm0, %v36_v24  ;;  %1704 = vmatmul.msk.f32.gmra.mxu3 %vm58_vm0, %v37_v25  ;;  %v2404_v46 = vor.u32 %v1891_v42, %v1750_v43  ;;  %v1748_v47 = vld [vmem:[%s2950_s4 + $0x40] sm:$0xf]  ;;  %v1893_v48 = vld [vmem:[%s2950_s4 + $0x4c] sm:$0xf0]  ;;  %v1887_v60 = vld [vmem:[%s2950_s4 + $0x24] sm:$0xf] }
  0x15   :  { %617 = vmatpush.bf16.msrb.mxu3 %v2349_v10  ;;  %604 = vmatpush.bf16.msrb.mxu2 %v2370_v22  ;;  %v1734_v61 = vld [vmem:[%s2950_s4 + $0x30] sm:$0xf0]  ;;  %v1889_v0 = vld [vmem:[%s2950_s4 + $0x2c] sm:$0xf0]  ;;  %v1888_v5 = vld [vmem:[%s2950_s4 + $0x2c] sm:$0xf] }
  0x16   :  { %1695 = vmatmul.msk.f32.gmra.mxu2 %vm58_vm0, %v37_v25  ;;  %578 = vmatpush.bf16.msrb.mxu0 %v2336_v2  ;;  %v2443_v1 = vor.u32 %v1887_v60, %v1734_v61  ;;  %v1742_v6 = vld [vmem:[%s2950_s4 + $0x38] sm:$0xf0]  ;;  %v1894_v13 = vld [vmem:[%s2950_s4 + $0x54] sm:$0xf0]  ;;  %v1883_v14 = vld [vmem:[%s2950_s4 + $0x4] sm:$0xf] }
  0x17   :  { %592 = vmatpush.bf16.msra.mxu1 %v2351_v11  ;;  %v2506_v43 = vperm.slane %v2233_v29, 2 }
  0x19   :  { %2961 = vst [vmem:[#allocation5_spill] sm:$0xff] %v2506_v43 }
  0x1b   :  { %1678 = vmatmul.msk.f32.gmra.mxu0 %vm58_vm0, %v38_v26  ;;  %593 = vmatpush.bf16.msra.mxu1 %v2404_v46 }
  0x1c   :  { %1686 = vmatmul.msk.f32.gmra.mxu1 %vm58_vm0, %v37_v25  ;;  %1705 = vmatmul.msk.f32.gmra.mxu3 %vm58_vm0, %v38_v26  ;;  %v2373_v25 = vor.u32 %v1897_v19, %v1764_v18  ;;  %v1718_v18 = vld [vmem:[%s2950_s4 + $0x10] sm:$0xf0]  ;;  %v1716_v19 = vld [vmem:[%s2950_s4] sm:$0xf] }
  0x1e   :  { %1696 = vmatmul.msk.f32.gmra.mxu2 %vm58_vm0, %v38_v26  ;;  %579 = vmatpush.bf16.msrb.mxu0 %v2373_v25 }
  0x1f   :  { %594 = vmatpush.bf16.msra.mxu1 %v2443_v1 }
  0x23   :  { %1679 = vmatmul.msk.f32.gmra.mxu0 %vm58_vm0, %v39_v27 }
  0x24   :  { %1687 = vmatmul.msk.f32.gmra.mxu1 %vm58_vm0, %v38_v26  ;;  %1706 = vmatmul.msk.f32.gmra.mxu3 %vm58_vm0, %v39_v27  ;;  %v1774_v26 = vld [vmem:[%s2950_s4 + $0x78] sm:$0xf0] }
  0x25   :  { %v2385_v33 = vor.u32 %v1896_v20, %v1774_v26  ;;  %v1885_v20 = vld [vmem:[%s2950_s4 + $0xc] sm:$0xf0]  ;;  %v2479_v26 = vor.u32 %v1883_v14, %v1718_v18 }
  0x26   :  { %1697 = vmatmul.msk.f32.gmra.mxu2 %vm58_vm0, %v39_v27 }
  0x27   :  { %618 = vmatpush.bf16.msrb.mxu3 %v2385_v33  ;;  %595 = vmatpush.bf16.msra.mxu1 %v2479_v26 }
  0x2b   :  { %1680 = vmatmul.msk.f32.gmra.mxu0 %vm58_vm0, %v40_v28  ;;  %715 = vmatpush.bf16.msrb.mxu1 %v2152_v9 }
  0x2c   :  { %1688 = vmatmul.msk.f32.gmra.mxu1 %vm58_vm0, %v39_v27  ;;  %1707 = vmatmul.msk.f32.gmra.mxu3 %vm58_vm0, %v40_v28  ;;  %v1772_v27 = vld [vmem:[%s2950_s4 + $0x68] sm:$0xf] }
  0x2e   :  { %1698 = vmatmul.msk.f32.gmra.mxu2 %vm58_vm0, %v40_v28 }
  0x2f   :  { %716 = vmatpush.bf16.msrb.mxu1 %v2175_v17 }
  0x33   :  { %1681 = vmatmul.msk.f32.gmra.mxu0 %vm58_vm0, %v41_v53  ;;  %717 = vmatpush.bf16.msrb.mxu1 %v2267_v39 }
  0x34   :  { %1689 = vmatmul.msk.f32.gmra.mxu1 %vm58_vm0, %v40_v28  ;;  %1708 = vmatmul.msk.f32.gmra.mxu3 %vm58_vm0, %v41_v53  ;;  %v1898_v28 = vld [vmem:[%s2950_s4 + $0x74] sm:$0xf0] }
  0x35   :  { %v2392_v36 = vor.u32 %v1898_v28, %v1772_v27  ;;  %v2483_v27 = vor.u32 %v1885_v20, %v1716_v19  ;;  %v1740_v28 = vld [vmem:[%s2950_s4 + $0x28] sm:$0xf] }
  0x36   :  { %1699 = vmatmul.msk.f32.gmra.mxu2 %vm58_vm0, %v41_v53 }
  0x37   :  { %605 = vmatpush.bf16.msrb.mxu2 %v2392_v36  ;;  %718 = vmatpush.bf16.msrb.mxu1 %v2327_v63 }
  0x3b   :  { %1682 = vmatmul.msk.f32.gmra.mxu0 %vm58_vm0, %v42_v35  ;;  %719 = vmatpush.bf16.msrb.mxu1 %v2351_v11 }
  0x3c   :  { %1690 = vmatmul.msk.f32.gmra.mxu1 %vm58_vm0, %v41_v53  ;;  %1709 = vmatmul.msk.f32.gmra.mxu3 %vm58_vm0, %v42_v35 }
  0x3e   :  { %1700 = vmatmul.msk.f32.gmra.mxu2 %vm58_vm0, %v42_v35 }
  0x3f   :  { %720 = vmatpush.bf16.msrb.mxu1 %v2404_v46 }
  0x43   :  { %721 = vmatpush.bf16.msrb.mxu1 %v2443_v1 }
  0x44   :  { %1691 = vmatmul.msk.f32.gmra.mxu1 %vm58_vm0, %v42_v35  ;;  %1710 = vmatmul.msk.f32.gmra.mxu3 %vm58_vm0, %v2131_v3 }
  0x46   :  { %1701 = vmatmul.msk.f32.gmra.mxu2 %vm58_vm0, %v2131_v3 }
  0x47   :  { %722 = vmatpush.bf16.msrb.mxu1 %v2479_v26 }
  0x4c   :  { %1692 = vmatmul.msk.f32.gmra.mxu1 %vm58_vm0, %v2131_v3 }
  0x80   :  { %v103_v44 = vpop.f32.mrf.mxu0 }
  0x81   :  { %v104_v49 = vadd.f32 %v103_v44, %v2265_v38  ;;  %v2293_v50 = vpop.f32.mrf.mxu1 }
  0x82   :  { %2960 = vst [vmem:[#allocation4_spill] sm:$0xff] %v2293_v50 }
  0x83   :  { %v315_v55 = vadd.f32 %v300_v41, %v104_v49  ;;  %v1892_v49 = vld [vmem:[%s2950_s4 + $0x4c] sm:$0xf] }
  0x85   :  { %v1711_v62 = vmul.f32 -1.442695, %v315_v55  ;;  %v2418_v55 = vor.u32 %v1893_v48, %v1748_v47  ;;  %v1724_v47 = vld [vmem:[%s2950_s4 + $0x8] sm:$0xf]  ;;  %v1886_v48 = vld [vmem:[%s2950_s4 + $0x14] sm:$0xf0] }
  0x86   :  { %v2526_v60 = vor.u32 %v1886_v48, %v1724_v47 }
  0x87   :  { %1924 = vpow2.f32 %v1711_v62  ;;  %v235_v7 = vpop.f32.mrf.mxu3  ;;  %v1732_v62 = vld [vmem:[%s2950_s4 + $0x20] sm:$0xf]  ;;  %580 = vmatpush.bf16.msrb.mxu0 %v2418_v55 }
  0x88   :  { %v236_v15 = vadd.f32 %v235_v7, %v2308_v56  ;;  %v2445_v4 = vor.u32 %v1889_v0, %v1732_v62  ;;  %v1756_v7 = vld [vmem:[%s2950_s4 + $0x48] sm:$0xf]  ;;  %v302_v62 = vperm.slane %v2238_v30, 2 }
  0x89   :  { %v147_v24 = vpop.f32.mrf.mxu1 }
  0x8a   :  { %v318_v31 = vadd.f32 %v303_v57, %v236_v15  ;;  %v148_v32 = vadd.f32 %v147_v24, %v2312_v58  ;;  %v1758_v57 = vld [vmem:[%s2950_s4 + $0x58] sm:$0xf0]  ;;  %v2465_v15 = vor.u32 %v1894_v13, %v1756_v7 }
  0x8b   :  { %v2426_v59 = vor.u32 %v1892_v49, %v1758_v57  ;;  %581 = vmatpush.bf16.msrb.mxu0 %v2445_v4  ;;  %v191_v57 = vpop.f32.mrf.mxu2 }
  0x8c   :  { %v1713_v37 = vmul.f32 -1.442695, %v318_v31  ;;  %v316_v41 = vadd.f32 %v301_v8, %v148_v32  ;;  %v2456_v8 = vor.u32 %v1888_v5, %v1742_v6  ;;  %v1890_v31 = vld [vmem:[%s2950_s4 + $0x34] sm:$0xf0]  ;;  %v1884_v32 = vld [vmem:[%s2950_s4 + $0xc] sm:$0xf]  ;;  %606 = vmatpush.bf16.msrb.mxu2 %v2465_v15  ;;  %v192_v61 = vadd.f32 %v191_v57, %v2506_v43 }
  0x8d   :  { %v1925_v44 = vpop.eup %1924  ;;  %619 = vmatpush.bf16.msrb.mxu3 %v2426_v59 }
  0x8e   :  { %v2416_v52 = vadd.f32 1.0, %v1925_v44  ;;  %1926 = vpow2.f32 %v1713_v37  ;;  %v1712_v53 = vmul.f32 -1.442695, %v316_v41  ;;  %v2498_v37 = vor.u32 %v1890_v31, %v1740_v28  ;;  %v1726_v41 = vld [vmem:[%s2950_s4 + $0x18] sm:$0xf0] }
  0x8f   :  { %v2510_v44 = vor.u32 %v1884_v32, %v1726_v41  ;;  %582 = vmatpush.bf16.msrb.mxu0 %v2483_v27  ;;  %v317_v5 = vadd.f32 %v302_v62, %v192_v61  ;;  %v238_v28 = vpop.f32.mrf.mxu3 }
  0x90   :  { %1928 = vrcp.f32 %v2416_v52  ;;  %607 = vmatpush.bf16.msrb.mxu2 %v2498_v37  ;;  %vm332_vm1 = vweird.f32 %v2416_v52  ;;  %v338_v18 = vand.u32 2147483648, %v2416_v52  ;;  %v336_v20 = vand.u32 2147483647, %v2416_v52 }
  0x91   :  { %1930 = vpow2.f32 %v1712_v53  ;;  %620 = vmatpush.bf16.msrb.mxu3 %v2456_v8 }
  0x92   :  { %v339_v48 = vor.u32 1.1754944e-38, %v338_v18  ;;  %vm337_vm6 = vcmp.eq.f32.partialorder %v336_v20, 8.507059e+37 }
  0x93   :  { %702 = vmatpush.bf16.msra.mxu0 %v2173_v16 }
  0x94   :  { %v1927_v24 = vpop.eup %1926  ;;  %608 = vmatpush.bf16.msrb.mxu2 %v2526_v60 }
  0x95   :  { %v2494_v35 = vadd.f32 1.0, %v1927_v24  ;;  %621 = vmatpush.bf16.msrb.mxu3 %v2510_v44 }
  0x96   :  { %v2503_v42 = vpop.eup %1928 }
  0x97   :  { %v1931_v49 = vpop.eup %1930  ;;  %v328_v53 = vmul.f32 %v2503_v42, %v2416_v52  ;;  %1932 = vrcp.f32 %v2494_v35  ;;  %703 = vmatpush.bf16.msra.mxu0 %v2253_v34  ;;  %vm333_vm2 = vweird.f32 %v2503_v42  ;;  %vm367_vm9 = vweird.f32 %v2494_v35 }
  0x98   :  { %v326_v29 = vadd.f32 1.0, %v1931_v49  ;;  %728 = vmatpush.bf16.msra.mxu2 %v2193_v23  ;;  %vm2551_vm3 = vmor %vm332_vm1, %vm333_vm2 }
  0x99   :  { %v329_v3 = vsub.f32 1.0, %v328_v53  ;;  %741 = vmatpush.bf16.msra.mxu3 %v2160_v12 }
  0x9a   :  { %1934 = vrcp.f32 %v326_v29  ;;  %v353_v24 = vand.u32 2147483648, %v326_v29  ;;  %v351_v41 = vand.u32 2147483647, %v326_v29  ;;  %vm347_vm5 = vweird.f32 %v326_v29 }
  0x9b   :  { %v330_v0 = vmul.f32 %v2503_v42, %v329_v3  ;;  %1936 = vtanh.f32 %v317_v5  ;;  %704 = vmatpush.bf16.msra.mxu0 %v2295_v51  ;;  %v373_v5 = vand.u32 2147483648, %v2494_v35 }
  0x9c   :  { %729 = vmatpush.bf16.msra.mxu2 %v2269_v40  ;;  %v354_v53 = vor.u32 1.1754944e-38, %v353_v24  ;;  %vm352_vm8 = vcmp.eq.f32.partialorder %v351_v41, 8.507059e+37  ;;  %v194_v24 = vpop.f32.mrf.mxu2 }
  0x9d   :  { %v2537_v6 = vpop.eup %1932  ;;  %742 = vmatpush.bf16.msra.mxu3 %v2187_v21  ;;  %v331_v13 = vadd.f32 %v2503_v42, %v330_v0 }
  0x9e   :  { %v363_v14 = vmul.f32 %v2537_v6, %v2494_v35  ;;  %vm368_vm10 = vweird.f32 %v2537_v6 }
  0x9f   :  { %v335_v32 = vsel %vm2551_vm3, %v2503_v42, %v331_v13  ;;  %705 = vmatpush.bf16.msra.mxu0 %v2336_v2  ;;  %vm369_vm11 = vmor %vm367_vm9, %vm368_vm10  ;;  %v374_v13 = vor.u32 1.1754944e-38, %v373_v5 }
  0xa0   :  { %v1935_v30 = vpop.eup %1934  ;;  %v364_v47 = vsub.f32 1.0, %v363_v14  ;;  %730 = vmatpush.bf16.msra.mxu2 %v2304_v54  ;;  %v340_v57 = vsel %vm337_vm6, %v339_v48, %v335_v32 }
  0xa1   :  { %v343_v7 = vmul.f32 %v1935_v30, %v326_v29  ;;  %743 = vmatpush.bf16.msra.mxu3 %v2281_v45  ;;  %vm348_vm4 = vweird.f32 %v1935_v30  ;;  %v1937_v49 = vpop.eup %1936 }
  0xa2   :  { %vm349_vm7 = vmor %vm347_vm5, %vm348_vm4  ;;  %v365_v61 = vmul.f32 %v2537_v6, %v364_v47  ;;  %v378_v62 = vmul.f32 %v1937_v49, %v340_v57  ;;  %v2625_v47 = vpop.f32.mrf.mxu3 }
  0xa3   :  { %v344_v19 = vsub.f32 1.0, %v343_v7  ;;  %706 = vmatpush.bf16.msra.mxu0 %v2373_v25  ;;  %v371_v7 = vand.u32 2147483647, %v2494_v35 }
  0xa4   :  { %731 = vmatpush.bf16.msra.mxu2 %v2370_v22  ;;  %v2623_v41 = vpop.f32.mrf.mxu2 }
  0xa5   :  { %v345_v31 = vmul.f32 %v1935_v30, %v344_v19  ;;  %744 = vmatpush.bf16.msra.mxu3 %v2349_v10  ;;  %vm372_vm12 = vcmp.eq.f32.partialorder %v371_v7, 8.507059e+37  ;;  %2964 = vst [vmem:[#allocation6_spill] sm:$0xff] %v2623_v41 }
  0xa7   :  { %v346_v52 = vadd.f32 %v1935_v30, %v345_v31  ;;  %707 = vmatpush.bf16.msra.mxu0 %v2418_v55  ;;  %v106_v31 = vpop.f32.mrf.mxu0 }
  0xa8   :  { %732 = vmatpush.bf16.msra.mxu2 %v2392_v36 }
  0xa9   :  { %v350_v42 = vsel %vm349_vm7, %v1935_v30, %v346_v52  ;;  %745 = vmatpush.bf16.msra.mxu3 %v2385_v33  ;;  %v366_v30 = vadd.f32 %v2537_v6, %v365_v61 }
  0xaa   :  { %v355_v3 = vsel %vm352_vm8, %v354_v53, %v350_v42  ;;  %v2633_v53 = vpop.f32.mrf.mxu3 }
  0xab   :  { %v377_v29 = vmul.f32 0.0, %v355_v3  ;;  %v370_v14 = vsel %vm369_vm11, %v2537_v6, %v366_v30  ;;  %708 = vmatpush.bf16.msra.mxu0 %v2445_v4  ;;  %v150_v6 = vpop.f32.mrf.mxu1  ;;  %2967 = vst [vmem:[#allocation9_spill] sm:$0xff] %v2633_v53 }
  0xac   :  { %733 = vmatpush.bf16.msra.mxu2 %v2465_v15  ;;  %v375_v18 = vsel %vm372_vm12, %v374_v13, %v370_v14  ;;  %v2631_v49 = vpop.f32.mrf.mxu2 }
  0xad   :  { %v2570_v0 = vadd.f32 %v378_v62, %v377_v29  ;;  %746 = vmatpush.bf16.msra.mxu3 %v2426_v59  ;;  %2966 = vst [vmem:[#allocation8_spill] sm:$0xff] %v2631_v49 }
  0xaf   :  { %1938 = vtanh.f32 %v2570_v0  ;;  %709 = vmatpush.bf16.msra.mxu0 %v2483_v27  ;;  %v2627_v48 = vpop.f32.mrf.mxu0 }
  0xb0   :  { %734 = vmatpush.bf16.msra.mxu2 %v2498_v37 }
  0xb1   :  { %747 = vmatpush.bf16.msra.mxu3 %v2456_v8 }
  0xb2   :  { %v2641_v61 = vpop.f32.mrf.mxu3 }
  0xb3   :  { %v2621_v32 = vpop.f32.mrf.mxu1  ;;  %2971 = vst [vmem:[#allocation13_spill] sm:$0xff] %v2641_v61 }
  0xb4   :  { %735 = vmatpush.bf16.msra.mxu2 %v2526_v60  ;;  %v2639_v3 = vpop.f32.mrf.mxu2 }
  0xb5   :  { %v1939_v35 = vpop.eup %1938  ;;  %748 = vmatpush.bf16.msra.mxu3 %v2510_v44  ;;  %2970 = vst [vmem:[#allocation12_spill] sm:$0xff] %v2639_v3 }
  0xb6   :  { %v381_v19 = vmul.f32 %v1939_v35, %v375_v18 }
  0xb7   :  { %v2635_v57 = vpop.f32.mrf.mxu0 }
  0xb8   :  { %v382_v20 = vpack.c.bf16 %v381_v19, %v381_v19  ;;  %2968 = vst [vmem:[#allocation10_spill] sm:$0xff] %v2635_v57 }
  0xba   :  { %583 = vmatmul.bf16.vlgmr.msrb.gmra.mxu0 %v382_v20  ;;  %596 = vmatmul.bf16.vlgmr.msra.gmra.mxu1 %v382_v20  ;;  %v2649_v30 = vpop.f32.mrf.mxu3 }
  0xbb   :  { %609 = vmatmul.bf16.vlgmr.msrb.gmra.mxu2 %v382_v20  ;;  %622 = vmatmul.bf16.vlgmr.msrb.gmra.mxu3 %v382_v20  ;;  %v2629_v52 = vpop.f32.mrf.mxu1  ;;  %2975 = vst [vmem:[#allocation17_spill] sm:$0xff] %v2649_v30 }
  0xbc   :  { %829 = vmatpush.bf16.msrb.mxu0 %v2173_v16  ;;  %842 = vmatpush.bf16.msra.mxu1 %v2152_v9  ;;  %2965 = vst [vmem:[#allocation7_spill] sm:$0xff] %v2629_v52  ;;  %v2647_v5 = vpop.f32.mrf.mxu2 }
  0xbd   :  { %855 = vmatpush.bf16.msrb.mxu2 %v2193_v23  ;;  %868 = vmatpush.bf16.msrb.mxu3 %v2160_v12  ;;  %2974 = vst [vmem:[#allocation16_spill] sm:$0xff] %v2647_v5 }
  0xbf   :  { %v2643_v29 = vpop.f32.mrf.mxu0 }
  0xc0   :  { %830 = vmatpush.bf16.msrb.mxu0 %v2253_v34  ;;  %843 = vmatpush.bf16.msra.mxu1 %v2175_v17  ;;  %2972 = vst [vmem:[#allocation14_spill] sm:$0xff] %v2643_v29 }
  0xc1   :  { %856 = vmatpush.bf16.msrb.mxu2 %v2269_v40  ;;  %869 = vmatpush.bf16.msrb.mxu3 %v2187_v21 }
  0xc2   :  { %v2657_v35 = vpop.f32.mrf.mxu3 }
  0xc3   :  { %v2637_v42 = vpop.f32.mrf.mxu1  ;;  %2979 = vst [vmem:[#allocation21_spill] sm:$0xff] %v2657_v35  ;;  %v107_v35 = vadd.f32 %v106_v31, %v2265_v38 }
  0xc4   :  { %831 = vmatpush.bf16.msrb.mxu0 %v2295_v51  ;;  %844 = vmatpush.bf16.msra.mxu1 %v2267_v39  ;;  %2969 = vst [vmem:[#allocation11_spill] sm:$0xff] %v2637_v42  ;;  %v2655_v14 = vpop.f32.mrf.mxu2 }
  0xc5   :  { %857 = vmatpush.bf16.msrb.mxu2 %v2304_v54  ;;  %870 = vmatpush.bf16.msrb.mxu3 %v2281_v45  ;;  %2978 = vst [vmem:[#allocation20_spill] sm:$0xff] %v2655_v14  ;;  %v151_v14 = vadd.f32 %v150_v6, %v2312_v58 }
  0xc7   :  { %v2651_v7 = vpop.f32.mrf.mxu0 }
  0xc8   :  { %832 = vmatpush.bf16.msrb.mxu0 %v2336_v2  ;;  %845 = vmatpush.bf16.msra.mxu1 %v2327_v63  ;;  %2976 = vst [vmem:[#allocation18_spill] sm:$0xff] %v2651_v7 }
  0xc9   :  { %858 = vmatpush.bf16.msrb.mxu2 %v2370_v22  ;;  %871 = vmatpush.bf16.msrb.mxu3 %v2349_v10 }
  0xca   :  { %v2665_v50 = vpop.f32.mrf.mxu3 }
  0xcb   :  { %v2645_v62 = vpop.f32.mrf.mxu1  ;;  %2983 = vst [vmem:[#allocation25_spill] sm:$0xff] %v2665_v50  ;;  %v239_v50 = vadd.f32 %v238_v28, %v2308_v56 }
  0xcc   :  { %833 = vmatpush.bf16.msrb.mxu0 %v2373_v25  ;;  %846 = vmatpush.bf16.msra.mxu1 %v2351_v11  ;;  %2973 = vst [vmem:[#allocation15_spill] sm:$0xff] %v2645_v62  ;;  %v2663_v20 = vpop.f32.mrf.mxu2 }
  0xcd   :  { %859 = vmatpush.bf16.msrb.mxu2 %v2392_v36  ;;  %872 = vmatpush.bf16.msrb.mxu3 %v2385_v33  ;;  %2982 = vst [vmem:[#allocation24_spill] sm:$0xff] %v2663_v20 }
  0xcf   :  { %v2659_v18 = vpop.f32.mrf.mxu0 }
  0xd0   :  { %834 = vmatpush.bf16.msrb.mxu0 %v2418_v55  ;;  %847 = vmatpush.bf16.msra.mxu1 %v2404_v46  ;;  %2980 = vst [vmem:[#allocation22_spill] sm:$0xff] %v2659_v18 }
  0xd1   :  { %860 = vmatpush.bf16.msrb.mxu2 %v2465_v15  ;;  %873 = vmatpush.bf16.msrb.mxu3 %v2426_v59 }
  0xd2   :  { %v2673_v7 = vpop.f32.mrf.mxu3 }
  0xd3   :  { %v2653_v13 = vpop.f32.mrf.mxu1  ;;  %2987 = vst [vmem:[#allocation29_spill] sm:$0xff] %v2673_v7 }
  0xd4   :  { %835 = vmatpush.bf16.msrb.mxu0 %v2445_v4  ;;  %848 = vmatpush.bf16.msra.mxu1 %v2443_v1  ;;  %2977 = vst [vmem:[#allocation19_spill] sm:$0xff] %v2653_v13  ;;  %v2671_v30 = vpop.f32.mrf.mxu2 }
  0xd5   :  { %861 = vmatpush.bf16.msrb.mxu2 %v2498_v37  ;;  %874 = vmatpush.bf16.msrb.mxu3 %v2456_v8  ;;  %2986 = vst [vmem:[#allocation28_spill] sm:$0xff] %v2671_v30 }
  0xd7   :  { %v2667_v62 = vpop.f32.mrf.mxu0 }
  0xd8   :  { %836 = vmatpush.bf16.msrb.mxu0 %v2483_v27  ;;  %849 = vmatpush.bf16.msra.mxu1 %v2479_v26  ;;  %2984 = vst [vmem:[#allocation26_spill] sm:$0xff] %v2667_v62 }
  0xd9   :  { %862 = vmatpush.bf16.msrb.mxu2 %v2526_v60  ;;  %875 = vmatpush.bf16.msrb.mxu3 %v2510_v44 }
  0xdb   :  { %v2661_v19 = vpop.f32.mrf.mxu1 }
  0xdc   :  { %2981 = vst [vmem:[#allocation23_spill] sm:$0xff] %v2661_v19 }
  0xe3   :  { %v2669_v5 = vpop.f32.mrf.mxu1 }
  0xe4   :  { %2985 = vst [vmem:[#allocation27_spill] sm:$0xff] %v2669_v5 }
 0x137   :  { %v584_v13 = vpop.f32.mrf.mxu0  ;;  %v597_v18 = vpop.f32.mrf.mxu1 }
 0x138   :  { %v634_v3 = vadd.f32 %v584_v13, %v107_v35  ;;  %v635_v19 = vadd.f32 %v597_v18, %v151_v14 }
 0x13a   :  { %v1842_v61 = vmul.f32 -1.442695, %v634_v3  ;;  %v1843_v20 = vmul.f32 -1.442695, %v635_v19 }
 0x13c   :  { %1940 = vpow2.f32 %v1842_v61  ;;  %v195_v61 = vadd.f32 %v194_v24, %v2506_v43 }
 0x13d   :  { %1942 = vpow2.f32 %v1843_v20 }
 0x13e   :  { %v610_v62 = vpop.f32.mrf.mxu2  ;;  %v623_v5 = vpop.f32.mrf.mxu3 }
 0x13f   :  { %v637_v29 = vadd.f32 %v623_v5, %v239_v50  ;;  %v586_v30 = vpop.f32.mrf.mxu0  ;;  %v599_v42 = vpop.f32.mrf.mxu1  ;;  %v636_v18 = vadd.f32 %v610_v62, %v195_v61 }
 0x141   :  { %v1844_v7 = vmul.f32 -1.442695, %v637_v29 }
 0x142   :  { %v1941_v49 = vpop.eup %1940 }
 0x143   :  { %v1943_v6 = vpop.eup %1942  ;;  %v644_v53 = vadd.f32 1.0, %v1941_v49  ;;  %1944 = vpow2.f32 %v1844_v7 }
 0x144   :  { %v645_v31 = vadd.f32 1.0, %v1943_v6 }
 0x145   :  { %1946 = vrcp.f32 %v644_v53  ;;  %v657_v30 = vand.u32 2147483648, %v644_v53  ;;  %v655_v20 = vand.u32 2147483647, %v644_v53  ;;  %vm651_vm15 = vweird.f32 %v644_v53 }
 0x146   :  { %1948 = vrcp.f32 %v645_v31  ;;  %v612_v13 = vpop.f32.mrf.mxu2  ;;  %v625_v3 = vpop.f32.mrf.mxu3  ;;  %v672_v49 = vand.u32 2147483648, %v645_v31  ;;  %vm666_vm0 = vweird.f32 %v645_v31 }
 0x147   :  { %v670_v13 = vand.u32 2147483647, %v645_v31  ;;  %v658_v62 = vor.u32 1.1754944e-38, %v657_v30  ;;  %vm656_vm3 = vcmp.eq.f32.partialorder %v655_v20, 8.507059e+37 }
 0x149   :  { %v1945_v14 = vpop.eup %1944  ;;  %vm671_vm4 = vcmp.eq.f32.partialorder %v670_v13, 8.507059e+37 }
 0x14a   :  { %v680_v28 = vadd.f32 1.0, %v1945_v14 }
 0x14b   :  { %v1947_v35 = vpop.eup %1946 }
 0x14c   :  { %v1949_v19 = vpop.eup %1948  ;;  %v647_v50 = vmul.f32 %v1947_v35, %v644_v53  ;;  %1950 = vrcp.f32 %v680_v28  ;;  %vm652_vm13 = vweird.f32 %v1947_v35  ;;  %v692_v30 = vand.u32 2147483648, %v680_v28 }
 0x14d   :  { %v662_v42 = vmul.f32 %v1949_v19, %v645_v31  ;;  %1952 = vtanh.f32 %v636_v18  ;;  %vm667_vm14 = vweird.f32 %v1949_v19  ;;  %vm653_vm1 = vmor %vm651_vm15, %vm652_vm13  ;;  %vm686_vm6 = vweird.f32 %v680_v28 }
 0x14e   :  { %v648_v29 = vsub.f32 1.0, %v647_v50  ;;  %vm668_vm2 = vmor %vm666_vm0, %vm667_vm14  ;;  %v673_v50 = vor.u32 1.1754944e-38, %v672_v49  ;;  %v693_v20 = vor.u32 1.1754944e-38, %v692_v30 }
 0x14f   :  { %v663_v5 = vsub.f32 1.0, %v662_v42 }
 0x150   :  { %v649_v7 = vmul.f32 %v1947_v35, %v648_v29 }
 0x151   :  { %v664_v6 = vmul.f32 %v1949_v19, %v663_v5 }
 0x152   :  { %v1951_v3 = vpop.eup %1950  ;;  %v650_v24 = vadd.f32 %v1947_v35, %v649_v7 }
 0x153   :  { %v665_v14 = vadd.f32 %v1949_v19, %v664_v6  ;;  %v682_v61 = vmul.f32 %v1951_v3, %v680_v28  ;;  %v1953_v18 = vpop.eup %1952  ;;  %vm687_vm5 = vweird.f32 %v1951_v3 }
 0x154   :  { %v654_v42 = vsel %vm653_vm1, %v1947_v35, %v650_v24  ;;  %v690_v35 = vand.u32 2147483647, %v680_v28  ;;  %vm688_vm7 = vmor %vm686_vm6, %vm687_vm5 }
 0x155   :  { %v659_v57 = vsel %vm656_vm3, %v658_v62, %v654_v42  ;;  %v669_v29 = vsel %vm668_vm2, %v1949_v19, %v665_v14  ;;  %v683_v52 = vsub.f32 1.0, %v682_v61  ;;  %v242_v14 = vadd.f32 %v2625_v47, %v2308_v56 }
 0x156   :  { %v674_v5 = vsel %vm671_vm4, %v673_v50, %v669_v29  ;;  %v697_v41 = vmul.f32 %v1953_v18, %v659_v57  ;;  %vm691_vm8 = vcmp.eq.f32.partialorder %v690_v35, 8.507059e+37 }
 0x157   :  { %v696_v43 = vmul.f32 %v674_v5, %v2570_v0  ;;  %v684_v7 = vmul.f32 %v1951_v3, %v683_v52  ;;  %v110_v0 = vadd.f32 %v2627_v48, %v2265_v38 }
 0x159   :  { %v2680_v53 = vadd.f32 %v697_v41, %v696_v43  ;;  %v685_v31 = vadd.f32 %v1951_v3, %v684_v7  ;;  %v154_v43 = vadd.f32 %v2621_v32, %v2312_v58 }
 0x15b   :  { %1954 = vtanh.f32 %v2680_v53  ;;  %v689_v49 = vsel %vm688_vm7, %v1951_v3, %v685_v31 }
 0x15c   :  { %v694_v6 = vsel %vm691_vm8, %v693_v20, %v689_v49  ;;  %v2988_v20 = vld [vmem:[#allocation5_spill] sm:$0xff] }
 0x161   :  { %v1955_v19 = vpop.eup %1954 }
 0x162   :  { %v700_v13 = vmul.f32 %v1955_v19, %v694_v6  ;;  %v2989_v19 = vld [vmem:[#allocation6_spill] sm:$0xff] }
 0x163   :  { %v198_v47 = vadd.f32 %v2989_v19, %v2988_v20 }
 0x164   :  { %v701_v57 = vpack.c.bf16 %v700_v13, %v700_v13 }
 0x166   :  { %710 = vmatmul.bf16.vlgmr.msra.gmra.mxu0 %v701_v57  ;;  %723 = vmatmul.bf16.vlgmr.msrb.gmra.mxu1 %v701_v57 }
 0x167   :  { %736 = vmatmul.bf16.vlgmr.msra.gmra.mxu2 %v701_v57  ;;  %749 = vmatmul.bf16.vlgmr.msra.gmra.mxu3 %v701_v57 }
 0x168   :  { %956 = vmatpush.bf16.msra.mxu0 %v2173_v16  ;;  %969 = vmatpush.bf16.msrb.mxu1 %v2152_v9 }
 0x169   :  { %982 = vmatpush.bf16.msra.mxu2 %v2193_v23  ;;  %995 = vmatpush.bf16.msra.mxu3 %v2160_v12 }
 0x16c   :  { %957 = vmatpush.bf16.msra.mxu0 %v2253_v34  ;;  %970 = vmatpush.bf16.msrb.mxu1 %v2175_v17 }
 0x16d   :  { %983 = vmatpush.bf16.msra.mxu2 %v2269_v40  ;;  %996 = vmatpush.bf16.msra.mxu3 %v2187_v21 }
 0x170   :  { %958 = vmatpush.bf16.msra.mxu0 %v2295_v51  ;;  %971 = vmatpush.bf16.msrb.mxu1 %v2267_v39 }
 0x171   :  { %984 = vmatpush.bf16.msra.mxu2 %v2304_v54  ;;  %997 = vmatpush.bf16.msra.mxu3 %v2281_v45 }
 0x174   :  { %959 = vmatpush.bf16.msra.mxu0 %v2336_v2  ;;  %972 = vmatpush.bf16.msrb.mxu1 %v2327_v63 }
 0x175   :  { %985 = vmatpush.bf16.msra.mxu2 %v2370_v22  ;;  %998 = vmatpush.bf16.msra.mxu3 %v2349_v10 }
 0x178   :  { %960 = vmatpush.bf16.msra.mxu0 %v2373_v25  ;;  %973 = vmatpush.bf16.msrb.mxu1 %v2351_v11 }
 0x179   :  { %986 = vmatpush.bf16.msra.mxu2 %v2392_v36  ;;  %999 = vmatpush.bf16.msra.mxu3 %v2385_v33 }
 0x17c   :  { %961 = vmatpush.bf16.msra.mxu0 %v2418_v55  ;;  %974 = vmatpush.bf16.msrb.mxu1 %v2404_v46 }
 0x17d   :  { %987 = vmatpush.bf16.msra.mxu2 %v2465_v15  ;;  %1000 = vmatpush.bf16.msra.mxu3 %v2426_v59 }
 0x180   :  { %962 = vmatpush.bf16.msra.mxu0 %v2445_v4  ;;  %975 = vmatpush.bf16.msrb.mxu1 %v2443_v1 }
 0x181   :  { %988 = vmatpush.bf16.msra.mxu2 %v2498_v37  ;;  %1001 = vmatpush.bf16.msra.mxu3 %v2456_v8 }
 0x184   :  { %963 = vmatpush.bf16.msra.mxu0 %v2483_v27  ;;  %976 = vmatpush.bf16.msrb.mxu1 %v2479_v26 }
 0x185   :  { %989 = vmatpush.bf16.msra.mxu2 %v2526_v60  ;;  %1002 = vmatpush.bf16.msra.mxu3 %v2510_v44 }
 0x1e3   :  { %v711_v41 = vpop.f32.mrf.mxu0  ;;  %v724_v52 = vpop.f32.mrf.mxu1 }
 0x1e4   :  { %v761_v28 = vadd.f32 %v711_v41, %v110_v0  ;;  %v762_v3 = vadd.f32 %v724_v52, %v154_v43 }
 0x1e6   :  { %v1845_v24 = vmul.f32 -1.442695, %v761_v28  ;;  %v1846_v62 = vmul.f32 -1.442695, %v762_v3 }
 0x1e8   :  { %1956 = vpow2.f32 %v1845_v24 }
 0x1e9   :  { %1958 = vpow2.f32 %v1846_v62 }
 0x1ea   :  { %v737_v61 = vpop.f32.mrf.mxu2  ;;  %v750_v50 = vpop.f32.mrf.mxu3 }
 0x1eb   :  { %v764_v42 = vadd.f32 %v750_v50, %v242_v14  ;;  %v713_v18 = vpop.f32.mrf.mxu0  ;;  %v726_v29 = vpop.f32.mrf.mxu1  ;;  %v763_v57 = vadd.f32 %v737_v61, %v198_v47 }
 0x1ed   :  { %v1847_v32 = vmul.f32 -1.442695, %v764_v42 }
 0x1ee   :  { %v1957_v5 = vpop.eup %1956 }
 0x1ef   :  { %v1959_v7 = vpop.eup %1958  ;;  %v771_v48 = vadd.f32 1.0, %v1957_v5  ;;  %1960 = vpow2.f32 %v1847_v32 }
 0x1f0   :  { %v772_v31 = vadd.f32 1.0, %v1959_v7 }
 0x1f1   :  { %1962 = vrcp.f32 %v771_v48  ;;  %v784_v3 = vand.u32 2147483648, %v771_v48  ;;  %v782_v14 = vand.u32 2147483647, %v771_v48  ;;  %vm778_vm11 = vweird.f32 %v771_v48 }
 0x1f2   :  { %1964 = vrcp.f32 %v772_v31  ;;  %v739_v30 = vpop.f32.mrf.mxu2  ;;  %v752_v35 = vpop.f32.mrf.mxu3  ;;  %v799_v24 = vand.u32 2147483648, %v772_v31  ;;  %v797_v42 = vand.u32 2147483647, %v772_v31  ;;  %vm793_vm12 = vweird.f32 %v772_v31 }
 0x1f3   :  { %v785_v61 = vor.u32 1.1754944e-38, %v784_v3  ;;  %vm783_vm15 = vcmp.eq.f32.partialorder %v782_v14, 8.507059e+37 }
 0x1f4   :  { %v800_v7 = vor.u32 1.1754944e-38, %v799_v24  ;;  %vm798_vm0 = vcmp.eq.f32.partialorder %v797_v42, 8.507059e+37  ;;  %v2991_v42 = vld [vmem:[#allocation10_spill] sm:$0xff] }
 0x1f5   :  { %v1961_v49 = vpop.eup %1960 }
 0x1f6   :  { %v807_v6 = vadd.f32 1.0, %v1961_v49 }
 0x1f7   :  { %v1963_v13 = vpop.eup %1962 }
 0x1f8   :  { %v1965_v43 = vpop.eup %1964  ;;  %v774_v0 = vmul.f32 %v1963_v13, %v771_v48  ;;  %1966 = vrcp.f32 %v807_v6  ;;  %vm779_vm9 = vweird.f32 %v1963_v13  ;;  %vm813_vm2 = vweird.f32 %v807_v6 }
 0x1f9   :  { %v789_v41 = vmul.f32 %v1965_v43, %v772_v31  ;;  %1968 = vtanh.f32 %v763_v57  ;;  %vm794_vm10 = vweird.f32 %v1965_v43  ;;  %vm780_vm13 = vmor %vm778_vm11, %vm779_vm9 }
 0x1fa   :  { %v775_v52 = vsub.f32 1.0, %v774_v0  ;;  %vm795_vm14 = vmor %vm793_vm12, %vm794_vm10 }
 0x1fb   :  { %v790_v28 = vsub.f32 1.0, %v789_v41 }
 0x1fc   :  { %v776_v62 = vmul.f32 %v1963_v13, %v775_v52 }
 0x1fd   :  { %v791_v50 = vmul.f32 %v1965_v43, %v790_v28  ;;  %v819_v28 = vand.u32 2147483648, %v807_v6 }
 0x1fe   :  { %v1967_v18 = vpop.eup %1966  ;;  %v777_v29 = vadd.f32 %v1963_v13, %v776_v62 }
 0x1ff   :  { %v792_v32 = vadd.f32 %v1965_v43, %v791_v50  ;;  %v809_v5 = vmul.f32 %v1967_v18, %v807_v6  ;;  %v1969_v35 = vpop.eup %1968  ;;  %vm814_vm1 = vweird.f32 %v1967_v18  ;;  %v820_v24 = vor.u32 1.1754944e-38, %v819_v28 }
 0x200   :  { %v781_v30 = vsel %vm780_vm13, %v1963_v13, %v777_v29  ;;  %v817_v13 = vand.u32 2147483647, %v807_v6  ;;  %vm815_vm3 = vmor %vm813_vm2, %vm814_vm1 }
 0x201   :  { %v786_v49 = vsel %vm783_vm15, %v785_v61, %v781_v30  ;;  %v796_v19 = vsel %vm795_vm14, %v1965_v43, %v792_v32  ;;  %v810_v47 = vsub.f32 1.0, %v809_v5 }
 0x202   :  { %v801_v57 = vsel %vm798_vm0, %v800_v7, %v796_v19  ;;  %v824_v0 = vmul.f32 %v1969_v35, %v786_v49  ;;  %vm818_vm4 = vcmp.eq.f32.partialorder %v817_v13, 8.507059e+37  ;;  %v2992_v35 = vld [vmem:[#allocation9_spill] sm:$0xff] }
 0x203   :  { %v823_v41 = vmul.f32 %v801_v57, %v2680_v53  ;;  %v811_v52 = vmul.f32 %v1967_v18, %v810_v47  ;;  %v2990_v53 = vld [vmem:[#allocation7_spill] sm:$0xff]  ;;  %v245_v49 = vadd.f32 %v2992_v35, %v2308_v56 }
 0x204   :  { %v157_v6 = vadd.f32 %v2990_v53, %v2312_v58 }
 0x205   :  { %v2724_v48 = vadd.f32 %v824_v0, %v823_v41  ;;  %v812_v31 = vadd.f32 %v1967_v18, %v811_v52 }
 0x207   :  { %1970 = vtanh.f32 %v2724_v48  ;;  %v816_v3 = vsel %vm815_vm3, %v1967_v18, %v812_v31  ;;  %v113_v18 = vadd.f32 %v2991_v42, %v2265_v38 }
 0x208   :  { %v821_v62 = vsel %vm818_vm4, %v820_v24, %v816_v3 }
 0x20d   :  { %v1971_v43 = vpop.eup %1970 }
 0x20e   :  { %v827_v14 = vmul.f32 %v1971_v43, %v821_v62 }
 0x210   :  { %v828_v50 = vpack.c.bf16 %v827_v14, %v827_v14  ;;  %v2993_v14 = vld [vmem:[#allocation8_spill] sm:$0xff] }
 0x212   :  { %837 = vmatmul.bf16.vlgmr.msrb.gmra.mxu0 %v828_v50  ;;  %850 = vmatmul.bf16.vlgmr.msra.gmra.mxu1 %v828_v50 }
 0x213   :  { %863 = vmatmul.bf16.vlgmr.msrb.gmra.mxu2 %v828_v50  ;;  %876 = vmatmul.bf16.vlgmr.msrb.gmra.mxu3 %v828_v50  ;;  %v201_v50 = vadd.f32 %v2993_v14, %v2988_v20 }
 0x214   :  { %1083 = vmatpush.bf16.msrb.mxu0 %v2173_v16  ;;  %1096 = vmatpush.bf16.msra.mxu1 %v2152_v9 }
 0x215   :  { %1109 = vmatpush.bf16.msrb.mxu2 %v2193_v23  ;;  %1122 = vmatpush.bf16.msrb.mxu3 %v2160_v12 }
 0x218   :  { %1084 = vmatpush.bf16.msrb.mxu0 %v2253_v34  ;;  %1097 = vmatpush.bf16.msra.mxu1 %v2175_v17 }
 0x219   :  { %1110 = vmatpush.bf16.msrb.mxu2 %v2269_v40  ;;  %1123 = vmatpush.bf16.msrb.mxu3 %v2187_v21 }
 0x21c   :  { %1085 = vmatpush.bf16.msrb.mxu0 %v2295_v51  ;;  %1098 = vmatpush.bf16.msra.mxu1 %v2267_v39 }
 0x21d   :  { %1111 = vmatpush.bf16.msrb.mxu2 %v2304_v54  ;;  %1124 = vmatpush.bf16.msrb.mxu3 %v2281_v45 }
 0x220   :  { %1086 = vmatpush.bf16.msrb.mxu0 %v2336_v2  ;;  %1099 = vmatpush.bf16.msra.mxu1 %v2327_v63 }
 0x221   :  { %1112 = vmatpush.bf16.msrb.mxu2 %v2370_v22  ;;  %1125 = vmatpush.bf16.msrb.mxu3 %v2349_v10 }
 0x224   :  { %1087 = vmatpush.bf16.msrb.mxu0 %v2373_v25  ;;  %1100 = vmatpush.bf16.msra.mxu1 %v2351_v11 }
 0x225   :  { %1113 = vmatpush.bf16.msrb.mxu2 %v2392_v36  ;;  %1126 = vmatpush.bf16.msrb.mxu3 %v2385_v33 }
 0x228   :  { %1088 = vmatpush.bf16.msrb.mxu0 %v2418_v55  ;;  %1101 = vmatpush.bf16.msra.mxu1 %v2404_v46 }
 0x229   :  { %1114 = vmatpush.bf16.msrb.mxu2 %v2465_v15  ;;  %1127 = vmatpush.bf16.msrb.mxu3 %v2426_v59 }
 0x22c   :  { %1089 = vmatpush.bf16.msrb.mxu0 %v2445_v4  ;;  %1102 = vmatpush.bf16.msra.mxu1 %v2443_v1 }
 0x22d   :  { %1115 = vmatpush.bf16.msrb.mxu2 %v2498_v37  ;;  %1128 = vmatpush.bf16.msrb.mxu3 %v2456_v8 }
 0x230   :  { %1090 = vmatpush.bf16.msrb.mxu0 %v2483_v27  ;;  %1103 = vmatpush.bf16.msra.mxu1 %v2479_v26 }
 0x231   :  { %1116 = vmatpush.bf16.msrb.mxu2 %v2526_v60  ;;  %1129 = vmatpush.bf16.msrb.mxu3 %v2510_v44 }
 0x28f   :  { %v838_v29 = vpop.f32.mrf.mxu0  ;;  %v851_v61 = vpop.f32.mrf.mxu1 }
 0x290   :  { %v888_v32 = vadd.f32 %v838_v29, %v113_v18  ;;  %v889_v5 = vadd.f32 %v851_v61, %v157_v6 }
 0x292   :  { %v1848_v7 = vmul.f32 -1.442695, %v888_v32  ;;  %v1849_v30 = vmul.f32 -1.442695, %v889_v5 }
 0x294   :  { %1972 = vpow2.f32 %v1848_v7 }
 0x295   :  { %1974 = vpow2.f32 %v1849_v30 }
 0x296   :  { %v864_v19 = vpop.f32.mrf.mxu2  ;;  %v877_v47 = vpop.f32.mrf.mxu3 }
 0x297   :  { %v891_v57 = vadd.f32 %v877_v47, %v245_v49  ;;  %v840_v0 = vpop.f32.mrf.mxu0  ;;  %v853_v41 = vpop.f32.mrf.mxu1  ;;  %v890_v42 = vadd.f32 %v864_v19, %v201_v50 }
 0x299   :  { %v1850_v52 = vmul.f32 -1.442695, %v891_v57 }
 0x29a   :  { %v1973_v31 = vpop.eup %1972 }
 0x29b   :  { %v1975_v28 = vpop.eup %1974  ;;  %v898_v13 = vadd.f32 1.0, %v1973_v31  ;;  %1976 = vpow2.f32 %v1850_v52 }
 0x29c   :  { %v899_v3 = vadd.f32 1.0, %v1975_v28 }
 0x29d   :  { %1978 = vrcp.f32 %v898_v13  ;;  %v911_v7 = vand.u32 2147483648, %v898_v13  ;;  %v909_v49 = vand.u32 2147483647, %v898_v13  ;;  %vm905_vm7 = vweird.f32 %v898_v13 }
 0x29e   :  { %1980 = vrcp.f32 %v899_v3  ;;  %v866_v24 = vpop.f32.mrf.mxu2  ;;  %v879_v43 = vpop.f32.mrf.mxu3  ;;  %v926_v30 = vand.u32 2147483648, %v899_v3  ;;  %v924_v57 = vand.u32 2147483647, %v899_v3  ;;  %vm920_vm8 = vweird.f32 %v899_v3 }
 0x29f   :  { %v912_v19 = vor.u32 1.1754944e-38, %v911_v7  ;;  %vm910_vm11 = vcmp.eq.f32.partialorder %v909_v49, 8.507059e+37 }
 0x2a0   :  { %v927_v28 = vor.u32 1.1754944e-38, %v926_v30  ;;  %vm925_vm12 = vcmp.eq.f32.partialorder %v924_v57, 8.507059e+37  ;;  %v2995_v57 = vld [vmem:[#allocation14_spill] sm:$0xff] }
 0x2a1   :  { %v1977_v62 = vpop.eup %1976 }
 0x2a2   :  { %v934_v53 = vadd.f32 1.0, %v1977_v62 }
 0x2a3   :  { %v1979_v6 = vpop.eup %1978 }
 0x2a4   :  { %v1981_v18 = vpop.eup %1980  ;;  %v901_v29 = vmul.f32 %v1979_v6, %v898_v13  ;;  %1982 = vrcp.f32 %v934_v53  ;;  %vm906_vm5 = vweird.f32 %v1979_v6  ;;  %vm940_vm14 = vweird.f32 %v934_v53 }
 0x2a5   :  { %v916_v61 = vmul.f32 %v1981_v18, %v899_v3  ;;  %1984 = vtanh.f32 %v890_v42  ;;  %vm921_vm6 = vweird.f32 %v1981_v18  ;;  %vm907_vm9 = vmor %vm905_vm7, %vm906_vm5 }
 0x2a6   :  { %v902_v32 = vsub.f32 1.0, %v901_v29  ;;  %vm922_vm10 = vmor %vm920_vm8, %vm921_vm6 }
 0x2a7   :  { %v917_v5 = vsub.f32 1.0, %v916_v61 }
 0x2a8   :  { %v903_v35 = vmul.f32 %v1979_v6, %v902_v32 }
 0x2a9   :  { %v918_v47 = vmul.f32 %v1981_v18, %v917_v5  ;;  %v946_v5 = vand.u32 2147483648, %v934_v53 }
 0x2aa   :  { %v1983_v0 = vpop.eup %1982  ;;  %v904_v41 = vadd.f32 %v1979_v6, %v903_v35 }
 0x2ab   :  { %v919_v52 = vadd.f32 %v1981_v18, %v918_v47  ;;  %v936_v31 = vmul.f32 %v1983_v0, %v934_v53  ;;  %v1985_v43 = vpop.eup %1984  ;;  %vm941_vm13 = vweird.f32 %v1983_v0  ;;  %v947_v30 = vor.u32 1.1754944e-38, %v946_v5 }
 0x2ac   :  { %v908_v24 = vsel %vm907_vm9, %v1979_v6, %v904_v41  ;;  %v944_v6 = vand.u32 2147483647, %v934_v53  ;;  %vm942_vm15 = vmor %vm940_vm14, %vm941_vm13 }
 0x2ad   :  { %v913_v62 = vsel %vm910_vm11, %v912_v19, %v908_v24  ;;  %v923_v14 = vsel %vm922_vm10, %v1981_v18, %v919_v52  ;;  %v937_v50 = vsub.f32 1.0, %v936_v31 }
 0x2ae   :  { %v928_v42 = vsel %vm925_vm12, %v927_v28, %v923_v14  ;;  %v951_v29 = vmul.f32 %v1985_v43, %v913_v62  ;;  %vm945_vm0 = vcmp.eq.f32.partialorder %v944_v6, 8.507059e+37  ;;  %v2996_v43 = vld [vmem:[#allocation13_spill] sm:$0xff] }
 0x2af   :  { %v950_v61 = vmul.f32 %v928_v42, %v2724_v48  ;;  %v938_v32 = vmul.f32 %v1983_v0, %v937_v50  ;;  %v2994_v48 = vld [vmem:[#allocation11_spill] sm:$0xff]  ;;  %v248_v62 = vadd.f32 %v2996_v43, %v2308_v56 }
 0x2b0   :  { %v160_v53 = vadd.f32 %v2994_v48, %v2312_v58 }
 0x2b1   :  { %v2768_v13 = vadd.f32 %v951_v29, %v950_v61  ;;  %v939_v3 = vadd.f32 %v1983_v0, %v938_v32 }
 0x2b3   :  { %1986 = vtanh.f32 %v2768_v13  ;;  %v943_v7 = vsel %vm942_vm15, %v1983_v0, %v939_v3  ;;  %v116_v0 = vadd.f32 %v2995_v57, %v2265_v38 }
 0x2b4   :  { %v948_v35 = vsel %vm945_vm0, %v947_v30, %v943_v7 }
 0x2b9   :  { %v1987_v18 = vpop.eup %1986 }
 0x2ba   :  { %v954_v49 = vmul.f32 %v1987_v18, %v948_v35 }
 0x2bc   :  { %v955_v47 = vpack.c.bf16 %v954_v49, %v954_v49  ;;  %v2997_v49 = vld [vmem:[#allocation12_spill] sm:$0xff] }
 0x2be   :  { %964 = vmatmul.bf16.vlgmr.msra.gmra.mxu0 %v955_v47  ;;  %977 = vmatmul.bf16.vlgmr.msrb.gmra.mxu1 %v955_v47 }
 0x2bf   :  { %990 = vmatmul.bf16.vlgmr.msra.gmra.mxu2 %v955_v47  ;;  %1003 = vmatmul.bf16.vlgmr.msra.gmra.mxu3 %v955_v47  ;;  %v204_v47 = vadd.f32 %v2997_v49, %v2988_v20 }
 0x2c0   :  { %1210 = vmatpush.bf16.msra.mxu0 %v2173_v16  ;;  %1223 = vmatpush.bf16.msrb.mxu1 %v2152_v9 }
 0x2c1   :  { %1236 = vmatpush.bf16.msra.mxu2 %v2193_v23  ;;  %1249 = vmatpush.bf16.msra.mxu3 %v2160_v12 }
 0x2c4   :  { %1211 = vmatpush.bf16.msra.mxu0 %v2253_v34  ;;  %1224 = vmatpush.bf16.msrb.mxu1 %v2175_v17 }
 0x2c5   :  { %1237 = vmatpush.bf16.msra.mxu2 %v2269_v40  ;;  %1250 = vmatpush.bf16.msra.mxu3 %v2187_v21 }
 0x2c8   :  { %1212 = vmatpush.bf16.msra.mxu0 %v2295_v51  ;;  %1225 = vmatpush.bf16.msrb.mxu1 %v2267_v39 }
 0x2c9   :  { %1238 = vmatpush.bf16.msra.mxu2 %v2304_v54  ;;  %1251 = vmatpush.bf16.msra.mxu3 %v2281_v45 }
 0x2cc   :  { %1213 = vmatpush.bf16.msra.mxu0 %v2336_v2  ;;  %1226 = vmatpush.bf16.msrb.mxu1 %v2327_v63 }
 0x2cd   :  { %1239 = vmatpush.bf16.msra.mxu2 %v2370_v22  ;;  %1252 = vmatpush.bf16.msra.mxu3 %v2349_v10 }
 0x2d0   :  { %1214 = vmatpush.bf16.msra.mxu0 %v2373_v25  ;;  %1227 = vmatpush.bf16.msrb.mxu1 %v2351_v11 }
 0x2d1   :  { %1240 = vmatpush.bf16.msra.mxu2 %v2392_v36  ;;  %1253 = vmatpush.bf16.msra.mxu3 %v2385_v33 }
 0x2d4   :  { %1215 = vmatpush.bf16.msra.mxu0 %v2418_v55  ;;  %1228 = vmatpush.bf16.msrb.mxu1 %v2404_v46 }
 0x2d5   :  { %1241 = vmatpush.bf16.msra.mxu2 %v2465_v15  ;;  %1254 = vmatpush.bf16.msra.mxu3 %v2426_v59 }
 0x2d8   :  { %1216 = vmatpush.bf16.msra.mxu0 %v2445_v4  ;;  %1229 = vmatpush.bf16.msrb.mxu1 %v2443_v1 }
 0x2d9   :  { %1242 = vmatpush.bf16.msra.mxu2 %v2498_v37  ;;  %1255 = vmatpush.bf16.msra.mxu3 %v2456_v8 }
 0x2dc   :  { %1217 = vmatpush.bf16.msra.mxu0 %v2483_v27  ;;  %1230 = vmatpush.bf16.msrb.mxu1 %v2479_v26 }
 0x2dd   :  { %1243 = vmatpush.bf16.msra.mxu2 %v2526_v60  ;;  %1256 = vmatpush.bf16.msra.mxu3 %v2510_v44 }
 0x33b   :  { %v965_v41 = vpop.f32.mrf.mxu0  ;;  %v978_v19 = vpop.f32.mrf.mxu1 }
 0x33c   :  { %v1015_v52 = vadd.f32 %v965_v41, %v116_v0  ;;  %v1016_v31 = vadd.f32 %v978_v19, %v160_v53 }
 0x33e   :  { %v1851_v28 = vmul.f32 -1.442695, %v1015_v52  ;;  %v1852_v24 = vmul.f32 -1.442695, %v1016_v31 }
 0x340   :  { %1988 = vpow2.f32 %v1851_v28 }
 0x341   :  { %1990 = vpow2.f32 %v1852_v24 }
 0x342   :  { %v991_v14 = vpop.f32.mrf.mxu2  ;;  %v1004_v50 = vpop.f32.mrf.mxu3 }
 0x343   :  { %v1018_v42 = vadd.f32 %v1004_v50, %v248_v62  ;;  %v967_v29 = vpop.f32.mrf.mxu0  ;;  %v980_v61 = vpop.f32.mrf.mxu1  ;;  %v1017_v57 = vadd.f32 %v991_v14, %v204_v47 }
 0x345   :  { %v1853_v32 = vmul.f32 -1.442695, %v1018_v42 }
 0x346   :  { %v1989_v3 = vpop.eup %1988 }
 0x347   :  { %v1991_v5 = vpop.eup %1990  ;;  %v1025_v6 = vadd.f32 1.0, %v1989_v3  ;;  %1992 = vpow2.f32 %v1853_v32 }
 0x348   :  { %v1026_v7 = vadd.f32 1.0, %v1991_v5 }
 0x349   :  { %1994 = vrcp.f32 %v1025_v6  ;;  %v1038_v28 = vand.u32 2147483648, %v1025_v6  ;;  %v1036_v62 = vand.u32 2147483647, %v1025_v6  ;;  %vm1032_vm3 = vweird.f32 %v1025_v6 }
 0x34a   :  { %1996 = vrcp.f32 %v1026_v7  ;;  %v993_v30 = vpop.f32.mrf.mxu2  ;;  %v1006_v18 = vpop.f32.mrf.mxu3  ;;  %v1053_v24 = vand.u32 2147483648, %v1026_v7  ;;  %v1051_v42 = vand.u32 2147483647, %v1026_v7  ;;  %vm1047_vm4 = vweird.f32 %v1026_v7 }
 0x34b   :  { %v1039_v14 = vor.u32 1.1754944e-38, %v1038_v28  ;;  %vm1037_vm7 = vcmp.eq.f32.partialorder %v1036_v62, 8.507059e+37 }
 0x34c   :  { %v1054_v5 = vor.u32 1.1754944e-38, %v1053_v24  ;;  %vm1052_vm8 = vcmp.eq.f32.partialorder %v1051_v42, 8.507059e+37  ;;  %v2999_v42 = vld [vmem:[#allocation18_spill] sm:$0xff] }
 0x34d   :  { %v1993_v35 = vpop.eup %1992 }
 0x34e   :  { %v1061_v48 = vadd.f32 1.0, %v1993_v35 }
 0x34f   :  { %v1995_v53 = vpop.eup %1994 }
 0x350   :  { %v1997_v0 = vpop.eup %1996  ;;  %v1028_v41 = vmul.f32 %v1995_v53, %v1025_v6  ;;  %1998 = vrcp.f32 %v1061_v48  ;;  %vm1033_vm1 = vweird.f32 %v1995_v53  ;;  %vm1067_vm10 = vweird.f32 %v1061_v48 }
 0x351   :  { %v1043_v19 = vmul.f32 %v1997_v0, %v1026_v7  ;;  %2000 = vtanh.f32 %v1017_v57  ;;  %vm1048_vm2 = vweird.f32 %v1997_v0  ;;  %vm1034_vm5 = vmor %vm1032_vm3, %vm1033_vm1 }
 0x352   :  { %v1029_v52 = vsub.f32 1.0, %v1028_v41  ;;  %vm1049_vm6 = vmor %vm1047_vm4, %vm1048_vm2 }
 0x353   :  { %v1044_v31 = vsub.f32 1.0, %v1043_v19 }
 0x354   :  { %v1030_v43 = vmul.f32 %v1995_v53, %v1029_v52 }
 0x355   :  { %v1045_v50 = vmul.f32 %v1997_v0, %v1044_v31  ;;  %v1073_v31 = vand.u32 2147483648, %v1061_v48 }
 0x356   :  { %v1999_v29 = vpop.eup %1998  ;;  %v1031_v61 = vadd.f32 %v1995_v53, %v1030_v43 }
 0x357   :  { %v1046_v32 = vadd.f32 %v1997_v0, %v1045_v50  ;;  %v1063_v3 = vmul.f32 %v1999_v29, %v1061_v48  ;;  %v2001_v18 = vpop.eup %2000  ;;  %vm1068_vm9 = vweird.f32 %v1999_v29  ;;  %v1074_v24 = vor.u32 1.1754944e-38, %v1073_v31 }
 0x358   :  { %v1035_v30 = vsel %vm1034_vm5, %v1995_v53, %v1031_v61  ;;  %v1071_v53 = vand.u32 2147483647, %v1061_v48  ;;  %vm1069_vm11 = vmor %vm1067_vm10, %vm1068_vm9 }
 0x359   :  { %v1040_v35 = vsel %vm1037_vm7, %v1039_v14, %v1035_v30  ;;  %v1050_v49 = vsel %vm1049_vm6, %v1997_v0, %v1046_v32  ;;  %v1064_v47 = vsub.f32 1.0, %v1063_v3 }
 0x35a   :  { %v1055_v57 = vsel %vm1052_vm8, %v1054_v5, %v1050_v49  ;;  %v1078_v41 = vmul.f32 %v2001_v18, %v1040_v35  ;;  %vm1072_vm12 = vcmp.eq.f32.partialorder %v1071_v53, 8.507059e+37  ;;  %v3000_v18 = vld [vmem:[#allocation17_spill] sm:$0xff] }
 0x35b   :  { %v1077_v19 = vmul.f32 %v1055_v57, %v2768_v13  ;;  %v1065_v52 = vmul.f32 %v1999_v29, %v1064_v47  ;;  %v2998_v13 = vld [vmem:[#allocation15_spill] sm:$0xff]  ;;  %v251_v35 = vadd.f32 %v3000_v18, %v2308_v56 }
 0x35c   :  { %v163_v48 = vadd.f32 %v2998_v13, %v2312_v58 }
 0x35d   :  { %v2812_v6 = vadd.f32 %v1078_v41, %v1077_v19  ;;  %v1066_v7 = vadd.f32 %v1999_v29, %v1065_v52 }
 0x35f   :  { %2002 = vtanh.f32 %v2812_v6  ;;  %v1070_v28 = vsel %vm1069_vm11, %v1999_v29, %v1066_v7  ;;  %v119_v29 = vadd.f32 %v2999_v42, %v2265_v38 }
 0x360   :  { %v1075_v43 = vsel %vm1072_vm12, %v1074_v24, %v1070_v28 }
 0x365   :  { %v2003_v0 = vpop.eup %2002 }
 0x366   :  { %v1081_v62 = vmul.f32 %v2003_v0, %v1075_v43 }
 0x368   :  { %v1082_v50 = vpack.c.bf16 %v1081_v62, %v1081_v62  ;;  %v3001_v62 = vld [vmem:[#allocation16_spill] sm:$0xff] }
 0x36a   :  { %1091 = vmatmul.bf16.vlgmr.msrb.gmra.mxu0 %v1082_v50  ;;  %1104 = vmatmul.bf16.vlgmr.msra.gmra.mxu1 %v1082_v50 }
 0x36b   :  { %1117 = vmatmul.bf16.vlgmr.msrb.gmra.mxu2 %v1082_v50  ;;  %1130 = vmatmul.bf16.vlgmr.msrb.gmra.mxu3 %v1082_v50  ;;  %v207_v50 = vadd.f32 %v3001_v62, %v2988_v20 }
 0x36c   :  { %1337 = vmatpush.bf16.msrb.mxu0 %v2173_v16  ;;  %1350 = vmatpush.bf16.msra.mxu1 %v2152_v9 }
 0x36d   :  { %1363 = vmatpush.bf16.msrb.mxu2 %v2193_v23  ;;  %1376 = vmatpush.bf16.msrb.mxu3 %v2160_v12 }
 0x370   :  { %1338 = vmatpush.bf16.msrb.mxu0 %v2253_v34  ;;  %1351 = vmatpush.bf16.msra.mxu1 %v2175_v17 }
 0x371   :  { %1364 = vmatpush.bf16.msrb.mxu2 %v2269_v40  ;;  %1377 = vmatpush.bf16.msrb.mxu3 %v2187_v21 }
 0x374   :  { %1339 = vmatpush.bf16.msrb.mxu0 %v2295_v51  ;;  %1352 = vmatpush.bf16.msra.mxu1 %v2267_v39 }
 0x375   :  { %1365 = vmatpush.bf16.msrb.mxu2 %v2304_v54  ;;  %1378 = vmatpush.bf16.msrb.mxu3 %v2281_v45 }
 0x378   :  { %1340 = vmatpush.bf16.msrb.mxu0 %v2336_v2  ;;  %1353 = vmatpush.bf16.msra.mxu1 %v2327_v63 }
 0x379   :  { %1366 = vmatpush.bf16.msrb.mxu2 %v2370_v22  ;;  %1379 = vmatpush.bf16.msrb.mxu3 %v2349_v10 }
 0x37c   :  { %1341 = vmatpush.bf16.msrb.mxu0 %v2373_v25  ;;  %1354 = vmatpush.bf16.msra.mxu1 %v2351_v11 }
 0x37d   :  { %1367 = vmatpush.bf16.msrb.mxu2 %v2392_v36  ;;  %1380 = vmatpush.bf16.msrb.mxu3 %v2385_v33 }
 0x380   :  { %1342 = vmatpush.bf16.msrb.mxu0 %v2418_v55  ;;  %1355 = vmatpush.bf16.msra.mxu1 %v2404_v46 }
 0x381   :  { %1368 = vmatpush.bf16.msrb.mxu2 %v2465_v15  ;;  %1381 = vmatpush.bf16.msrb.mxu3 %v2426_v59 }
 0x384   :  { %1343 = vmatpush.bf16.msrb.mxu0 %v2445_v4  ;;  %1356 = vmatpush.bf16.msra.mxu1 %v2443_v1 }
 0x385   :  { %1369 = vmatpush.bf16.msrb.mxu2 %v2498_v37  ;;  %1382 = vmatpush.bf16.msrb.mxu3 %v2456_v8 }
 0x388   :  { %1344 = vmatpush.bf16.msrb.mxu0 %v2483_v27  ;;  %1357 = vmatpush.bf16.msra.mxu1 %v2479_v26 }
 0x389   :  { %1370 = vmatpush.bf16.msrb.mxu2 %v2526_v60  ;;  %1383 = vmatpush.bf16.msrb.mxu3 %v2510_v44 }
 0x3e7   :  { %v1092_v61 = vpop.f32.mrf.mxu0  ;;  %v1105_v14 = vpop.f32.mrf.mxu1 }
 0x3e8   :  { %v1142_v32 = vadd.f32 %v1092_v61, %v119_v29  ;;  %v1143_v3 = vadd.f32 %v1105_v14, %v163_v48 }
 0x3ea   :  { %v1854_v5 = vmul.f32 -1.442695, %v1142_v32  ;;  %v1855_v30 = vmul.f32 -1.442695, %v1143_v3 }
 0x3ec   :  { %2004 = vpow2.f32 %v1854_v5 }
 0x3ed   :  { %2006 = vpow2.f32 %v1855_v30 }
 0x3ee   :  { %v1118_v49 = vpop.f32.mrf.mxu2  ;;  %v1131_v47 = vpop.f32.mrf.mxu3 }
 0x3ef   :  { %v1145_v57 = vadd.f32 %v1131_v47, %v251_v35  ;;  %v1094_v41 = vpop.f32.mrf.mxu0  ;;  %v1107_v19 = vpop.f32.mrf.mxu1  ;;  %v1144_v42 = vadd.f32 %v1118_v49, %v207_v50 }
 0x3f1   :  { %v1856_v52 = vmul.f32 -1.442695, %v1145_v57 }
 0x3f2   :  { %v2005_v7 = vpop.eup %2004 }
 0x3f3   :  { %v2007_v31 = vpop.eup %2006  ;;  %v1152_v53 = vadd.f32 1.0, %v2005_v7  ;;  %2008 = vpow2.f32 %v1856_v52 }
 0x3f4   :  { %v1153_v28 = vadd.f32 1.0, %v2007_v31 }
 0x3f5   :  { %2010 = vrcp.f32 %v1152_v53  ;;  %v1165_v5 = vand.u32 2147483648, %v1152_v53  ;;  %v1163_v35 = vand.u32 2147483647, %v1152_v53  ;;  %vm1159_vm15 = vweird.f32 %v1152_v53 }
 0x3f6   :  { %2012 = vrcp.f32 %v1153_v28  ;;  %v1120_v24 = vpop.f32.mrf.mxu2  ;;  %v1133_v0 = vpop.f32.mrf.mxu3  ;;  %v1180_v30 = vand.u32 2147483648, %v1153_v28  ;;  %v1178_v57 = vand.u32 2147483647, %v1153_v28  ;;  %vm1174_vm0 = vweird.f32 %v1153_v28 }
 0x3f7   :  { %v1166_v49 = vor.u32 1.1754944e-38, %v1165_v5  ;;  %vm1164_vm3 = vcmp.eq.f32.partialorder %v1163_v35, 8.507059e+37 }
 0x3f8   :  { %v1181_v31 = vor.u32 1.1754944e-38, %v1180_v30  ;;  %vm1179_vm4 = vcmp.eq.f32.partialorder %v1178_v57, 8.507059e+37 }
 0x3f9   :  { %v2009_v43 = vpop.eup %2008 }
 0x3fa   :  { %v1188_v13 = vadd.f32 1.0, %v2009_v43 }
 0x3fb   :  { %v2011_v48 = vpop.eup %2010 }
 0x3fc   :  { %v2013_v29 = vpop.eup %2012  ;;  %v1155_v61 = vmul.f32 %v2011_v48, %v1152_v53  ;;  %2014 = vrcp.f32 %v1188_v13  ;;  %vm1160_vm13 = vweird.f32 %v2011_v48  ;;  %vm1194_vm6 = vweird.f32 %v1188_v13 }
 0x3fd   :  { %v1170_v14 = vmul.f32 %v2013_v29, %v1153_v28  ;;  %2016 = vtanh.f32 %v1144_v42  ;;  %vm1175_vm14 = vweird.f32 %v2013_v29  ;;  %vm1161_vm1 = vmor %vm1159_vm15, %vm1160_vm13 }
 0x3fe   :  { %v1156_v32 = vsub.f32 1.0, %v1155_v61  ;;  %vm1176_vm2 = vmor %vm1174_vm0, %vm1175_vm14 }
 0x3ff   :  { %v1171_v3 = vsub.f32 1.0, %v1170_v14 }
 0x400   :  { %v1157_v18 = vmul.f32 %v2011_v48, %v1156_v32 }
 0x401   :  { %v1172_v47 = vmul.f32 %v2013_v29, %v1171_v3  ;;  %v1200_v3 = vand.u32 2147483648, %v1188_v13 }
 0x402   :  { %v2015_v41 = vpop.eup %2014  ;;  %v1158_v19 = vadd.f32 %v2011_v48, %v1157_v18 }
 0x403   :  { %v1173_v52 = vadd.f32 %v2013_v29, %v1172_v47  ;;  %v1190_v7 = vmul.f32 %v2015_v41, %v1188_v13  ;;  %v2017_v0 = vpop.eup %2016  ;;  %vm1195_vm5 = vweird.f32 %v2015_v41  ;;  %v1201_v30 = vor.u32 1.1754944e-38, %v1200_v3 }
 0x404   :  { %v1162_v24 = vsel %vm1161_vm1, %v2011_v48, %v1158_v19  ;;  %v1198_v48 = vand.u32 2147483647, %v1188_v13  ;;  %vm1196_vm7 = vmor %vm1194_vm6, %vm1195_vm5 }
 0x405   :  { %v1167_v43 = vsel %vm1164_vm3, %v1166_v49, %v1162_v24  ;;  %v1177_v62 = vsel %vm1176_vm2, %v2013_v29, %v1173_v52  ;;  %v1191_v50 = vsub.f32 1.0, %v1190_v7 }
 0x406   :  { %v1182_v42 = vsel %vm1179_vm4, %v1181_v31, %v1177_v62  ;;  %v1205_v61 = vmul.f32 %v2017_v0, %v1167_v43  ;;  %vm1199_vm8 = vcmp.eq.f32.partialorder %v1198_v48, 8.507059e+37 }
 0x407   :  { %v1204_v14 = vmul.f32 %v1182_v42, %v2812_v6  ;;  %v1192_v32 = vmul.f32 %v2015_v41, %v1191_v50 }
 0x409   :  { %v2856_v53 = vadd.f32 %v1205_v61, %v1204_v14  ;;  %v1193_v28 = vadd.f32 %v2015_v41, %v1192_v32 }
 0x40b   :  { %2018 = vtanh.f32 %v2856_v53  ;;  %v1197_v5 = vsel %vm1196_vm7, %v2015_v41, %v1193_v28 }
 0x40c   :  { %v1202_v18 = vsel %vm1199_vm8, %v1201_v30, %v1197_v5 }
 0x411   :  { %v2019_v29 = vpop.eup %2018 }
 0x412   :  { %v1208_v35 = vmul.f32 %v2019_v29, %v1202_v18 }
 0x414   :  { %v1209_v47 = vpack.c.bf16 %v1208_v35, %v1208_v35 }
 0x416   :  { %1218 = vmatmul.bf16.vlgmr.msra.gmra.mxu0 %v1209_v47  ;;  %1231 = vmatmul.bf16.vlgmr.msrb.gmra.mxu1 %v1209_v47 }
 0x417   :  { %1244 = vmatmul.bf16.vlgmr.msra.gmra.mxu2 %v1209_v47  ;;  %1257 = vmatmul.bf16.vlgmr.msra.gmra.mxu3 %v1209_v47 }
 0x418   :  { %1464 = vmatpush.bf16.msra.mxu0 %v2173_v16  ;;  %1477 = vmatpush.bf16.msrb.mxu1 %v2152_v9  ;;  %v3002_v9 = vld [vmem:[#allocation19_spill] sm:$0xff]  ;;  %v3003_v16 = vld [vmem:[#allocation22_spill] sm:$0xff] }
 0x419   :  { %1490 = vmatpush.bf16.msra.mxu2 %v2193_v23  ;;  %1503 = vmatpush.bf16.msra.mxu3 %v2160_v12  ;;  %v166_v12 = vadd.f32 %v3002_v9, %v2312_v58 }
 0x41c   :  { %1465 = vmatpush.bf16.msra.mxu0 %v2253_v34  ;;  %1478 = vmatpush.bf16.msrb.mxu1 %v2175_v17  ;;  %v122_v17 = vadd.f32 %v3003_v16, %v2265_v38 }
 0x41d   :  { %1491 = vmatpush.bf16.msra.mxu2 %v2269_v40  ;;  %1504 = vmatpush.bf16.msra.mxu3 %v2187_v21 }
 0x420   :  { %1466 = vmatpush.bf16.msra.mxu0 %v2295_v51  ;;  %1479 = vmatpush.bf16.msrb.mxu1 %v2267_v39  ;;  %v3004_v51 = vld [vmem:[#allocation21_spill] sm:$0xff] }
 0x421   :  { %1492 = vmatpush.bf16.msra.mxu2 %v2304_v54  ;;  %1505 = vmatpush.bf16.msra.mxu3 %v2281_v45  ;;  %v254_v54 = vadd.f32 %v3004_v51, %v2308_v56 }
 0x424   :  { %1467 = vmatpush.bf16.msra.mxu0 %v2336_v2  ;;  %1480 = vmatpush.bf16.msrb.mxu1 %v2327_v63 }
 0x425   :  { %1493 = vmatpush.bf16.msra.mxu2 %v2370_v22  ;;  %1506 = vmatpush.bf16.msra.mxu3 %v2349_v10 }
 0x428   :  { %1468 = vmatpush.bf16.msra.mxu0 %v2373_v25  ;;  %1481 = vmatpush.bf16.msrb.mxu1 %v2351_v11 }
 0x429   :  { %1494 = vmatpush.bf16.msra.mxu2 %v2392_v36  ;;  %1507 = vmatpush.bf16.msra.mxu3 %v2385_v33 }
 0x42c   :  { %1469 = vmatpush.bf16.msra.mxu0 %v2418_v55  ;;  %1482 = vmatpush.bf16.msrb.mxu1 %v2404_v46 }
 0x42d   :  { %1495 = vmatpush.bf16.msra.mxu2 %v2465_v15  ;;  %1508 = vmatpush.bf16.msra.mxu3 %v2426_v59 }
 0x430   :  { %1470 = vmatpush.bf16.msra.mxu0 %v2445_v4  ;;  %1483 = vmatpush.bf16.msrb.mxu1 %v2443_v1 }
 0x431   :  { %1496 = vmatpush.bf16.msra.mxu2 %v2498_v37  ;;  %1509 = vmatpush.bf16.msra.mxu3 %v2456_v8  ;;  %v3005_v8 = vld [vmem:[#allocation20_spill] sm:$0xff] }
 0x432   :  { %v210_v15 = vadd.f32 %v3005_v8, %v2988_v20 }
 0x434   :  { %1471 = vmatpush.bf16.msra.mxu0 %v2483_v27  ;;  %1484 = vmatpush.bf16.msrb.mxu1 %v2479_v26 }
 0x435   :  { %1497 = vmatpush.bf16.msra.mxu2 %v2526_v60  ;;  %1510 = vmatpush.bf16.msra.mxu3 %v2510_v44 }
 0x493   :  { %v1219_v21 = vpop.f32.mrf.mxu0  ;;  %v1232_v23 = vpop.f32.mrf.mxu1 }
 0x494   :  { %v1269_v34 = vadd.f32 %v1219_v21, %v122_v17  ;;  %v1270_v39 = vadd.f32 %v1232_v23, %v166_v12 }
 0x496   :  { %v1857_v40 = vmul.f32 -1.442695, %v1269_v34  ;;  %v1858_v45 = vmul.f32 -1.442695, %v1270_v39 }
 0x498   :  { %2020 = vpow2.f32 %v1857_v40  ;;  %v3007_v40 = vld [vmem:[#allocation26_spill] sm:$0xff] }
 0x499   :  { %2022 = vpow2.f32 %v1858_v45  ;;  %v125_v45 = vadd.f32 %v3007_v40, %v2265_v38 }
 0x49a   :  { %v1245_v63 = vpop.f32.mrf.mxu2  ;;  %v1258_v2 = vpop.f32.mrf.mxu3 }
 0x49b   :  { %v1272_v10 = vadd.f32 %v1258_v2, %v254_v54  ;;  %v1221_v11 = vpop.f32.mrf.mxu0  ;;  %v1234_v22 = vpop.f32.mrf.mxu1  ;;  %v1271_v37 = vadd.f32 %v1245_v63, %v210_v15 }
 0x49c   :  { %v3008_v22 = vld [vmem:[#allocation25_spill] sm:$0xff] }
 0x49d   :  { %v1859_v25 = vmul.f32 -1.442695, %v1272_v10 }
 0x49e   :  { %v2021_v33 = vpop.eup %2020 }
 0x49f   :  { %v2023_v36 = vpop.eup %2022  ;;  %v1279_v46 = vadd.f32 1.0, %v2021_v33  ;;  %2024 = vpow2.f32 %v1859_v25  ;;  %v257_v25 = vadd.f32 %v3008_v22, %v2308_v56 }
 0x4a0   :  { %v1280_v55 = vadd.f32 1.0, %v2023_v36 }
 0x4a1   :  { %2026 = vrcp.f32 %v1279_v46  ;;  %v1292_v41 = vand.u32 2147483648, %v1279_v46  ;;  %v1290_v52 = vand.u32 2147483647, %v1279_v46  ;;  %vm1286_vm11 = vweird.f32 %v1279_v46 }
 0x4a2   :  { %2028 = vrcp.f32 %v1280_v55  ;;  %v1247_v59 = vpop.f32.mrf.mxu2  ;;  %v1260_v1 = vpop.f32.mrf.mxu3  ;;  %v1307_v19 = vand.u32 2147483648, %v1280_v55  ;;  %v1305_v31 = vand.u32 2147483647, %v1280_v55  ;;  %vm1301_vm12 = vweird.f32 %v1280_v55 }
 0x4a3   :  { %v1293_v43 = vor.u32 1.1754944e-38, %v1292_v41  ;;  %vm1291_vm15 = vcmp.eq.f32.partialorder %v1290_v52, 8.507059e+37 }
 0x4a4   :  { %v1308_v42 = vor.u32 1.1754944e-38, %v1307_v19  ;;  %vm1306_vm0 = vcmp.eq.f32.partialorder %v1305_v31, 8.507059e+37 }
 0x4a5   :  { %v2025_v4 = vpop.eup %2024 }
 0x4a6   :  { %v1315_v26 = vadd.f32 1.0, %v2025_v4 }
 0x4a7   :  { %v2027_v27 = vpop.eup %2026 }
 0x4a8   :  { %v2029_v44 = vpop.eup %2028  ;;  %v1282_v60 = vmul.f32 %v2027_v27, %v1279_v46  ;;  %2030 = vrcp.f32 %v1315_v26  ;;  %vm1287_vm9 = vweird.f32 %v2027_v27  ;;  %v1327_v47 = vand.u32 2147483648, %v1315_v26 }
 0x4a9   :  { %v1297_v6 = vmul.f32 %v2029_v44, %v1280_v55  ;;  %2032 = vtanh.f32 %v1271_v37  ;;  %vm1302_vm10 = vweird.f32 %v2029_v44  ;;  %vm1288_vm13 = vmor %vm1286_vm11, %vm1287_vm9  ;;  %vm1321_vm2 = vweird.f32 %v1315_v26 }
 0x4aa   :  { %v1283_v13 = vsub.f32 1.0, %v1282_v60  ;;  %vm1303_vm14 = vmor %vm1301_vm12, %vm1302_vm10  ;;  %v1325_v9 = vand.u32 2147483647, %v1315_v26  ;;  %v1328_v16 = vor.u32 1.1754944e-38, %v1327_v47  ;;  %v3009_v60 = vld [vmem:[#allocation24_spill] sm:$0xff] }
 0x4ab   :  { %v1298_v57 = vsub.f32 1.0, %v1297_v6  ;;  %v213_v6 = vadd.f32 %v3009_v60, %v2988_v20 }
 0x4ac   :  { %v1284_v49 = vmul.f32 %v2027_v27, %v1283_v13  ;;  %vm1326_vm4 = vcmp.eq.f32.partialorder %v1325_v9, 8.507059e+37 }
 0x4ad   :  { %v1299_v7 = vmul.f32 %v2029_v44, %v1298_v57 }
 0x4ae   :  { %v2031_v24 = vpop.eup %2030  ;;  %v1285_v0 = vadd.f32 %v2027_v27, %v1284_v49 }
 0x4af   :  { %v1300_v62 = vadd.f32 %v2029_v44, %v1299_v7  ;;  %v1317_v50 = vmul.f32 %v2031_v24, %v1315_v26  ;;  %v2033_v14 = vpop.eup %2032  ;;  %vm1322_vm1 = vweird.f32 %v2031_v24 }
 0x4b0   :  { %v1289_v61 = vsel %vm1288_vm13, %v2027_v27, %v1285_v0  ;;  %vm1323_vm3 = vmor %vm1321_vm2, %vm1322_vm1 }
 0x4b1   :  { %v1294_v32 = vsel %vm1291_vm15, %v1293_v43, %v1289_v61  ;;  %v1304_v28 = vsel %vm1303_vm14, %v2029_v44, %v1300_v62  ;;  %v1318_v3 = vsub.f32 1.0, %v1317_v50 }
 0x4b2   :  { %v1309_v48 = vsel %vm1306_vm0, %v1308_v42, %v1304_v28  ;;  %v1332_v5 = vmul.f32 %v2033_v14, %v1294_v32 }
 0x4b3   :  { %v1331_v30 = vmul.f32 %v1309_v48, %v2856_v53  ;;  %v1319_v29 = vmul.f32 %v2031_v24, %v1318_v3  ;;  %v3006_v53 = vld [vmem:[#allocation23_spill] sm:$0xff] }
 0x4b4   :  { %v169_v39 = vadd.f32 %v3006_v53, %v2312_v58 }
 0x4b5   :  { %v2900_v18 = vadd.f32 %v1332_v5, %v1331_v30  ;;  %v1320_v35 = vadd.f32 %v2031_v24, %v1319_v29 }
 0x4b7   :  { %2034 = vtanh.f32 %v2900_v18  ;;  %v1324_v12 = vsel %vm1323_vm3, %v2031_v24, %v1320_v35 }
 0x4b8   :  { %v1329_v21 = vsel %vm1326_vm4, %v1328_v16, %v1324_v12 }
 0x4bd   :  { %v2035_v17 = vpop.eup %2034 }
 0x4be   :  { %v1335_v23 = vmul.f32 %v2035_v17, %v1329_v21 }
 0x4c0   :  { %v1336_v34 = vpack.c.bf16 %v1335_v23, %v1335_v23 }
 0x4c2   :  { %1345 = vmatmul.bf16.vlgmr.msrb.gmra.mxu0 %v1336_v34  ;;  %1358 = vmatmul.bf16.vlgmr.msra.gmra.mxu1 %v1336_v34 }
 0x4c3   :  { %1371 = vmatmul.bf16.vlgmr.msrb.gmra.mxu2 %v1336_v34  ;;  %1384 = vmatmul.bf16.vlgmr.msrb.gmra.mxu3 %v1336_v34 }
 0x53f   :  { %v1346_v51 = vpop.f32.mrf.mxu0  ;;  %v1359_v54 = vpop.f32.mrf.mxu1 }
 0x540   :  { %v1396_v63 = vadd.f32 %v1346_v51, %v125_v45  ;;  %v1397_v2 = vadd.f32 %v1359_v54, %v169_v39 }
 0x542   :  { %v1860_v10 = vmul.f32 -1.442695, %v1396_v63  ;;  %v1861_v11 = vmul.f32 -1.442695, %v1397_v2 }
 0x544   :  { %2036 = vpow2.f32 %v1860_v10  ;;  %v3011_v10 = vld [vmem:[#allocation27_spill] sm:$0xff] }
 0x545   :  { %2038 = vpow2.f32 %v1861_v11  ;;  %v172_v11 = vadd.f32 %v3011_v10, %v2312_v58 }
 0x546   :  { %v1372_v33 = vpop.f32.mrf.mxu2  ;;  %v1385_v36 = vpop.f32.mrf.mxu3 }
 0x547   :  { %v1399_v46 = vadd.f32 %v1385_v36, %v257_v25  ;;  %v1348_v55 = vpop.f32.mrf.mxu0  ;;  %v1361_v59 = vpop.f32.mrf.mxu1  ;;  %v1398_v41 = vadd.f32 %v1372_v33, %v213_v6 }
 0x548   :  { %v3012_v59 = vld [vmem:[#allocation29_spill] sm:$0xff] }
 0x549   :  { %v1862_v1 = vmul.f32 -1.442695, %v1399_v46 }
 0x54a   :  { %v2037_v4 = vpop.eup %2036 }
 0x54b   :  { %v2039_v8 = vpop.eup %2038  ;;  %v1406_v15 = vadd.f32 1.0, %v2037_v4  ;;  %2040 = vpow2.f32 %v1862_v1  ;;  %v260_v1 = vadd.f32 %v3012_v59, %v2308_v56  ;;  %v1918_v56 = vld [vmem:[%s2953_s5 + $0x18] sm:$0xff] }
 0x54c   :  { %v1407_v26 = vadd.f32 1.0, %v2039_v8  ;;  %1638 = vmatpush.bf16.msrb.mxu0 %v1918_v56 }
 0x54d   :  { %2042 = vrcp.f32 %v1406_v15  ;;  %v1419_v24 = vand.u32 2147483648, %v1406_v15  ;;  %v1417_v62 = vand.u32 2147483647, %v1406_v15  ;;  %vm1413_vm7 = vweird.f32 %v1406_v15 }
 0x54e   :  { %2044 = vrcp.f32 %v1407_v26  ;;  %v1374_v27 = vpop.f32.mrf.mxu2  ;;  %v1387_v37 = vpop.f32.mrf.mxu3  ;;  %v1434_v0 = vand.u32 2147483648, %v1407_v26  ;;  %v1432_v42 = vand.u32 2147483647, %v1407_v26  ;;  %vm1428_vm8 = vweird.f32 %v1407_v26 }
 0x54f   :  { %v1420_v32 = vor.u32 1.1754944e-38, %v1419_v24  ;;  %vm1418_vm11 = vcmp.eq.f32.partialorder %v1417_v62, 8.507059e+37 }
 0x550   :  { %v1435_v48 = vor.u32 1.1754944e-38, %v1434_v0  ;;  %vm1433_vm12 = vcmp.eq.f32.partialorder %v1432_v42, 8.507059e+37 }
 0x551   :  { %v2041_v44 = vpop.eup %2040 }
 0x552   :  { %v1442_v13 = vadd.f32 1.0, %v2041_v44 }
 0x553   :  { %v2043_v57 = vpop.eup %2042 }
 0x554   :  { %v2045_v19 = vpop.eup %2044  ;;  %v1409_v49 = vmul.f32 %v2043_v57, %v1406_v15  ;;  %2046 = vrcp.f32 %v1442_v13  ;;  %vm1414_vm5 = vweird.f32 %v2043_v57  ;;  %v1454_v34 = vand.u32 2147483648, %v1442_v13 }
 0x555   :  { %v1424_v52 = vmul.f32 %v2045_v19, %v1407_v26  ;;  %2048 = vtanh.f32 %v1398_v41  ;;  %vm1429_vm6 = vweird.f32 %v2045_v19  ;;  %vm1415_vm9 = vmor %vm1413_vm7, %vm1414_vm5  ;;  %vm1448_vm14 = vweird.f32 %v1442_v13 }
 0x556   :  { %v1410_v7 = vsub.f32 1.0, %v1409_v49  ;;  %vm1430_vm10 = vmor %vm1428_vm8, %vm1429_vm6  ;;  %v1452_v53 = vand.u32 2147483647, %v1442_v13  ;;  %v1455_v40 = vor.u32 1.1754944e-38, %v1454_v34 }
 0x557   :  { %v1425_v31 = vsub.f32 1.0, %v1424_v52 }
 0x558   :  { %v1411_v43 = vmul.f32 %v2043_v57, %v1410_v7  ;;  %vm1453_vm0 = vcmp.eq.f32.partialorder %v1452_v53, 8.507059e+37 }
 0x559   :  { %v1426_v50 = vmul.f32 %v2045_v19, %v1425_v31 }
 0x55a   :  { %v2047_v61 = vpop.eup %2046  ;;  %v1412_v14 = vadd.f32 %v2043_v57, %v1411_v43  ;;  %v1916_v43 = vld [vmem:[%s2953_s5 + $0x8] sm:$0xff] }
 0x55b   :  { %v1427_v28 = vadd.f32 %v2045_v19, %v1426_v50  ;;  %v1444_v3 = vmul.f32 %v2047_v61, %v1442_v13  ;;  %v2049_v30 = vpop.eup %2048  ;;  %vm1449_vm13 = vweird.f32 %v2047_v61 }
 0x55c   :  { %v1416_v5 = vsel %vm1415_vm9, %v2043_v57, %v1412_v14  ;;  %vm1450_vm15 = vmor %vm1448_vm14, %vm1449_vm13  ;;  %v1917_v57 = vld [vmem:[%s2953_s5 + $0x10] sm:$0xff]  ;;  %vm1630_vm13 = vcmask 523264   ;;  %vm1661_vm14 = vcmask 7168  }
 0x55d   :  { %v1421_v29 = vsel %vm1418_vm11, %v1420_v32, %v1416_v5  ;;  %v1431_v35 = vsel %vm1430_vm10, %v2045_v19, %v1427_v28  ;;  %v1445_v47 = vsub.f32 1.0, %v1444_v3  ;;  %v3013_v19 = vld [vmem:[#allocation28_spill] sm:$0xff]  ;;  %1639 = vmatpush.bf16.msrb.mxu0 %v1917_v57 }
 0x55e   :  { %v1436_v9 = vsel %vm1433_vm12, %v1435_v48, %v1431_v35  ;;  %v1459_v12 = vmul.f32 %v2049_v30, %v1421_v29  ;;  %v216_v49 = vadd.f32 %v3013_v19, %v2988_v20  ;;  %v1915_v28 = vld [vmem:[%s2953_s5] sm:$0xff]  ;;  %s2068_s5 = smov 64  }
 0x55f   :  { %v1458_v16 = vmul.f32 %v1436_v9, %v2900_v18  ;;  %v1446_v17 = vmul.f32 %v2047_v61, %v1445_v47  ;;  %v3010_v18 = vld [vmem:[#allocation4_spill] sm:$0xff] }
 0x560   :  { %v128_v2 = vadd.f32 %v3010_v18, %v2265_v38 }
 0x561   :  { %v2912_v21 = vadd.f32 %v1459_v12, %v1458_v16  ;;  %v1447_v23 = vadd.f32 %v2047_v61, %v1446_v17  ;;  %1640 = vmatpush.bf16.msrb.mxu0 %v1916_v43 }
 0x563   :  { %2050 = vtanh.f32 %v2912_v21  ;;  %v1451_v39 = vsel %vm1450_vm15, %v2047_v61, %v1447_v23 }
 0x564   :  { %v1456_v51 = vsel %vm1453_vm0, %v1455_v40, %v1451_v39 }
 0x565   :  { %1641 = vmatpush.bf16.msrb.mxu0 %v1915_v28 }
 0x569   :  { %v2051_v45 = vpop.eup %2050 }
 0x56a   :  { %v1462_v54 = vmul.f32 %v2051_v45, %v1456_v51 }
 0x56c   :  { %v1463_v63 = vpack.c.bf16 %v1462_v54, %v1462_v54 }
 0x56e   :  { %1472 = vmatmul.bf16.vlgmr.msra.gmra.mxu0 %v1463_v63  ;;  %1485 = vmatmul.bf16.vlgmr.msrb.gmra.mxu1 %v1463_v63 }
 0x56f   :  { %1498 = vmatmul.bf16.vlgmr.msra.gmra.mxu2 %v1463_v63  ;;  %1511 = vmatmul.bf16.vlgmr.msra.gmra.mxu3 %v1463_v63 }
 0x5eb   :  { %v1473_v22 = vpop.f32.mrf.mxu0  ;;  %v1486_v25 = vpop.f32.mrf.mxu1 }
 0x5ec   :  { %v1523_v33 = vadd.f32 %v1473_v22, %v128_v2  ;;  %v1524_v36 = vadd.f32 %v1486_v25, %v172_v11 }
 0x5ee   :  { %v1863_v46 = vmul.f32 -1.442695, %v1523_v33  ;;  %v1864_v55 = vmul.f32 -1.442695, %v1524_v36 }
 0x5f0   :  { %2052 = vpow2.f32 %v1863_v46  ;;  %v1921_v46 = vld [vmem:[%s2954_s6] ss:$0 sm:$0xff] }
 0x5f1   :  { %2054 = vpow2.f32 %v1864_v55 }
 0x5f2   :  { %v1499_v4 = vpop.f32.mrf.mxu2  ;;  %v1512_v8 = vpop.f32.mrf.mxu3 }
 0x5f3   :  { %v1526_v15 = vadd.f32 %v1512_v8, %v260_v1  ;;  %v1475_v26 = vpop.f32.mrf.mxu0  ;;  %v1488_v27 = vpop.f32.mrf.mxu1  ;;  %v1525_v31 = vadd.f32 %v1499_v4, %v216_v49  ;;  %v1922_v1 = vld [vmem:[%s2955_s7] ss:$0 sm:$0xff] }
 0x5f5   :  { %v1865_v38 = vmul.f32 -1.442695, %v1526_v15 }
 0x5f6   :  { %v2053_v37 = vpop.eup %2052 }
 0x5f7   :  { %v2055_v44 = vpop.eup %2054  ;;  %v1533_v58 = vadd.f32 1.0, %v2053_v37  ;;  %2056 = vpow2.f32 %v1865_v38 }
 0x5f8   :  { %v1534_v60 = vadd.f32 1.0, %v2055_v44 }
 0x5f9   :  { %2058 = vrcp.f32 %v1533_v58  ;;  %v1546_v61 = vand.u32 2147483648, %v1533_v58  ;;  %v1544_v20 = vand.u32 2147483647, %v1533_v58  ;;  %vm1540_vm3 = vweird.f32 %v1533_v58 }
 0x5fa   :  { %2060 = vrcp.f32 %v1534_v60  ;;  %v1501_v6 = vpop.f32.mrf.mxu2  ;;  %v1514_v13 = vpop.f32.mrf.mxu3  ;;  %v1561_v14 = vand.u32 2147483648, %v1534_v60  ;;  %v1559_v48 = vand.u32 2147483647, %v1534_v60  ;;  %vm1555_vm4 = vweird.f32 %v1534_v60 }
 0x5fb   :  { %v1547_v29 = vor.u32 1.1754944e-38, %v1546_v61  ;;  %vm1545_vm7 = vcmp.eq.f32.partialorder %v1544_v20, 8.507059e+37 }
 0x5fc   :  { %v1562_v9 = vor.u32 1.1754944e-38, %v1561_v14  ;;  %vm1560_vm8 = vcmp.eq.f32.partialorder %v1559_v48, 8.507059e+37 }
 0x5fd   :  { %v2057_v41 = vpop.eup %2056 }
 0x5fe   :  { %v1569_v52 = vadd.f32 1.0, %v2057_v41 }
 0x5ff   :  { %v2059_v7 = vpop.eup %2058 }
 0x600   :  { %v2061_v24 = vpop.eup %2060  ;;  %v1536_v0 = vmul.f32 %v2059_v7, %v1533_v58  ;;  %2062 = vrcp.f32 %v1569_v52  ;;  %vm1541_vm1 = vweird.f32 %v2059_v7  ;;  %v1581_v63 = vand.u32 2147483648, %v1569_v52 }
 0x601   :  { %v1551_v62 = vmul.f32 %v2061_v24, %v1534_v60  ;;  %2064 = vtanh.f32 %v1525_v31  ;;  %vm1556_vm2 = vweird.f32 %v2061_v24  ;;  %vm1542_vm5 = vmor %vm1540_vm3, %vm1541_vm1  ;;  %vm1575_vm10 = vweird.f32 %v1569_v52 }
 0x602   :  { %v1537_v50 = vsub.f32 1.0, %v1536_v0  ;;  %vm1557_vm6 = vmor %vm1555_vm4, %vm1556_vm2  ;;  %v1579_v18 = vand.u32 2147483647, %v1569_v52  ;;  %v1582_v10 = vor.u32 1.1754944e-38, %v1581_v63 }
 0x603   :  { %v1552_v42 = vsub.f32 1.0, %v1551_v62 }
 0x604   :  { %v1538_v32 = vmul.f32 %v2059_v7, %v1537_v50  ;;  %vm1580_vm12 = vcmp.eq.f32.partialorder %v1579_v18, 8.507059e+37 }
 0x605   :  { %v1553_v3 = vmul.f32 %v2061_v24, %v1552_v42 }
 0x606   :  { %v2063_v5 = vpop.eup %2062  ;;  %v1539_v30 = vadd.f32 %v2059_v7, %v1538_v32 }
 0x607   :  { %v1554_v35 = vadd.f32 %v2061_v24, %v1553_v3  ;;  %v1571_v47 = vmul.f32 %v2063_v5, %v1569_v52  ;;  %v2065_v16 = vpop.eup %2064  ;;  %vm1576_vm9 = vweird.f32 %v2063_v5 }
 0x608   :  { %v1543_v12 = vsel %vm1542_vm5, %v2059_v7, %v1539_v30  ;;  %vm1577_vm11 = vmor %vm1575_vm10, %vm1576_vm9 }
 0x609   :  { %v1548_v17 = vsel %vm1545_vm7, %v1547_v29, %v1543_v12  ;;  %v1558_v23 = vsel %vm1557_vm6, %v2061_v24, %v1554_v35  ;;  %v1572_v34 = vsub.f32 1.0, %v1571_v47 }
 0x60a   :  { %v1586_v53 = vmul.f32 %v2065_v16, %v1548_v17  ;;  %v1563_v39 = vsel %vm1560_vm8, %v1562_v9, %v1558_v23 }
 0x60b   :  { %v1573_v40 = vmul.f32 %v2063_v5, %v1572_v34  ;;  %v1585_v45 = vmul.f32 %v1563_v39, %v2912_v21  ;;  %v14_v21 = vstv %s2956_s8 }
 0x60c   :  { %15 = vst [vmem:[#allocation3] sm:$0x1] %v14_v21 }
 0x60d   :  { %v1587_v51 = vadd.f32 %v1586_v53, %v1585_v45  ;;  %v1574_v54 = vadd.f32 %v2063_v5, %v1573_v40 }
 0x60f   :  { %2066 = vtanh.f32 %v1587_v51  ;;  %v1578_v2 = vsel %vm1577_vm11, %v2063_v5, %v1574_v54 }
 0x610   :  { %v1583_v22 = vsel %vm1580_vm12, %v1582_v10, %v1578_v2 }
 0x613   :  { %v1923_v27 = vld [vmem:[#allocation3] ss:$0 sm:$0xff] }
 0x615   :  { %v2067_v11 = vpop.eup %2066 }
 0x616   :  { %v1589_v25 = vmul.f32 %v2067_v11, %v1583_v22 }
 0x618   :  { %v1590_v33 = vpack.c.bf16 %v1589_v25, %v1589_v25 }
 0x61a   :  { %1604 = vrot.lane.b32.xlu0 %v1590_v33, %s2068_s5 }
 0x68c   :  { %v1605_v36 = vpop.permute.xlu0 %1604 }
 0x68d   :  { %1882 = vmatmul.msk.bf16.vlgmr.msrb.gmra.mxu0 %vm1630_vm13, %v1605_v36 }
 0x70a   :  { %v1643_v55 = vpop.f32.mrf.mxu0 }
 0x70b   :  { %v1644_v59 = vadd.f32 %v1921_v46, %v1643_v55 }
 0x70d   :  { %v1647_v4 = vmax.f32 %v1644_v59, 0.0 }
 0x70f   :  { %v1652_v8 = vmul.f32 %v1922_v1, %v1647_v4 }
 0x711   :  { %v1653_v15 = vsel %vm1630_vm13, %v1652_v8, 0.0 }
 0x712   :  { %v1645_v26 = vpop.f32.mrf.mxu0  ;;  %1654 = vadd.xlane.f32.xlu0 %v1653_v15 }
 0x785   :  { %v1655_v38 = vpop.xlane.xlu0 %1654 }
 0x786   :  { %v1660_v37 = vadd.f32 %v1923_v27, %v1655_v38 }
 0x788   :  { %1662 = vst.msk [vmem:[%s2957_s9] sm:$0xff] %vm1661_vm14, %v1660_v37 }

</bundles_post_ra>
